<compile_context>
chip_gen: v7x
topology: tpu7x:2x2x1
jax: 0.10.0
libtpu: 0.0.40
codegen_flags: <defaults>
</compile_context>

<pallas_src>
import numpy as np
import jax
import jax.numpy as jnp
from jax import lax
from jax.experimental import pallas as pl
from jax.experimental.pallas import tpu as pltpu

# ---------------- configuration consistent with the module -------------------
B = 2            # batch
C = 2            # in_channels
NUM = 8          # num_MFKs
L = 128          # signal length == len(ff)
NC = 5           # num_classes
KS = 7           # conv kernel size
STRIDE = 3
PAD = 1
COUT = 64
CIN = C * NUM                                   # 16
LOUT = (L + 2 * PAD - KS) // STRIDE + 1         # 42
POOL = 10                                       # AdaptiveAvgPool1d(10)
ROWS = B * CIN                                  # 32 filter-bank rows

# Row offsets inside the packed constant slab (8-aligned starts, lane offset 0).
R_FCAT = 0                       # (B*POOL*NC, B*COUT) = (100, 128)
R_GSUM = 104                     # (B*NC, B*POOL*NC)   = (10, 100)
R_DMASK = 120                    # (B*POOL*NC, POOL)   = (100, 10)
R_POOLM = 224                    # (LOUT, POOL)        = (42, 10)
R_BCONV = 272                    # (B*COUT, 1)         = (128, 1)
R_FCB = 400                      # (B*NC, 1)           = (10, 1)
R_TOT = 416


def mcn_wfk_kernel(xe_ref, selT_ref, wkbd_ref, consts_ref, out_ref):
    # --- Wiener_fast filter bank: one lane-dense multiply --------------------
    # TODO(synk): torch.fft.rfft in Wiener_fast.forward is computed but its
    # result is never used by the model, so it is omitted here.
    y = xe_ref[0:ROWS, :] * xe_ref[ROWS:2 * ROWS, :]        # (B*CIN, L)

    # --- Conv1d(k=7, s=3, p=1) + bias + ReLU, whole batch via block-diag -----
    # Per-tap MXU accumulation: no im2col staging / concatenates.
    g = jnp.dot(y, selT_ref[0], preferred_element_type=jnp.float32)
    acc = jnp.dot(wkbd_ref[0], g, preferred_element_type=jnp.float32)
    for k in range(1, KS):                                  # static unroll
        g = jnp.dot(y, selT_ref[k], preferred_element_type=jnp.float32)
        acc = acc + jnp.dot(wkbd_ref[k], g, preferred_element_type=jnp.float32)
    bconv = consts_ref[R_BCONV:R_BCONV + B * COUT, 0:1]     # (B*COUT, 1)
    acc = jnp.maximum(acc + bconv, 0.0)                     # (B*COUT, LOUT)

    # --- AdaptiveAvgPool1d(10) -----------------------------------------------
    poolm = consts_ref[R_POOLM:R_POOLM + LOUT, 0:POOL]      # (LOUT, POOL)
    pooled = jnp.dot(acc, poolm, preferred_element_type=jnp.float32)   # (B*COUT, POOL)

    # --- Flatten + Linear, block-diagonal over batch, one store --------------
    #   q[a*POOL*NC + p*NC + n, p'] = sum_o fc_w[n, o*POOL+p] * pooled[a*COUT+o, p']
    #   m[a*NC+n, p']              = q[a*50 + p'*NC + n, p']   (gsum @ (q*dmask))
    #   logits[a*NC+n]             = sum_{p'} m[a*NC+n, p'] + fc_b[n]
    fcat = consts_ref[R_FCAT:R_FCAT + B * POOL * NC, :]                 # (100, 128)
    q = jnp.dot(fcat, pooled, preferred_element_type=jnp.float32)       # (100, POOL)
    dmask = consts_ref[R_DMASK:R_DMASK + B * POOL * NC, 0:POOL]         # (100, POOL)
    gsum = consts_ref[R_GSUM:R_GSUM + B * NC, 0:B * POOL * NC]          # (10, 100)
    m = jnp.dot(gsum, q * dmask, preferred_element_type=jnp.float32)    # (B*NC, POOL)
    fcb = consts_ref[R_FCB:R_FCB + B * NC, 0:1]                         # (B*NC, 1)
    out_ref[...] = (jnp.sum(m, axis=1, keepdims=True) + fcb).astype(out_ref.dtype)


def mcn_wfk_forward(x_bcl, filters, conv_w, conv_b, fc_w, fc_b):
    """x_bcl: (B, C, L) float32 (PyTorch layout). Returns (B, NC)."""
    # Effective Wiener gains: eff[c,ii,:] = filt[c,ii,:]*prod_{j<ii}(1-filt[c,j,:])
    one_minus = 1.0 - filters                               # (C, NUM, L)
    cp = jnp.cumprod(one_minus, axis=1)
    prefix = jnp.concatenate([jnp.ones_like(cp[:, :1]), cp[:, :-1]], axis=1)
    eff = filters * prefix                                  # (C, NUM, L)

    # Replicated signal rows + effective gains, packed into one operand.
    # Row order b*CIN + c*NUM + ii (same channel order as torch.cat).
    x_rep = jnp.repeat(x_bcl, NUM, axis=1).reshape(ROWS, L)
    eff_rep = jnp.tile(eff.reshape(CIN, L), (B, 1))
    xe = jnp.concatenate([x_rep, eff_rep], axis=0)          # (2*B*CIN, L)

    # Transposed 0/1 selection matrices: selT[k, l, t] = 1 iff l == 3t + k - PAD
    # (out-of-range taps stay all-zero -> implicit zero padding).
    selT_np = np.zeros((KS, L, LOUT), np.float32)
    for k in range(KS):
        for t in range(LOUT):
            l = STRIDE * t + k - PAD
            if 0 <= l < L:
                selT_np[k, l, t] = 1.0
    selT = jnp.asarray(selT_np)

    # Per-tap conv weights, block-diagonal over batch: (KS, B*COUT, B*CIN).
    wk = jnp.transpose(conv_w, (2, 0, 1))                   # (KS, COUT, CIN)
    eyeB = jnp.eye(B, dtype=jnp.float32)
    wkbd = jnp.einsum('koc,ab->kaobc', wk, eyeB).reshape(KS, B * COUT, B * CIN)

    # ---- packed constant slab -----------------------------------------------
    # AdaptiveAvgPool1d(10) averaging matrix (PyTorch start/end semantics).
    poolm_np = np.zeros((LOUT, POOL), np.float32)
    for p in range(POOL):
        s = (p * LOUT) // POOL
        e = -(-((p + 1) * LOUT) // POOL)                    # ceil
        poolm_np[s:e, p] = 1.0 / (e - s)

    # FC weight regrouped + block-diag: fcat_bd[a*POOL*NC+p*NC+n, b*COUT+o]
    #   = fc_w[n, o*POOL+p] * [a == b].
    fcw3 = fc_w.reshape(NC, COUT, POOL)                     # [n, o, p]
    fcat = jnp.transpose(fcw3, (2, 0, 1)).reshape(POOL * NC, COUT)
    fcat_bd = jnp.einsum('ro,ab->arbo', fcat, eyeB).reshape(B * POOL * NC, B * COUT)

    # Diagonal-pick mask and class group-sum matrices for the flatten+linear.
    dmask_np = np.zeros((POOL * NC, POOL), np.float32)
    for p in range(POOL):
        for n in range(NC):
            dmask_np[p * NC + n, p] = 1.0
    dmask_bd = np.tile(dmask_np, (B, 1))                    # (B*POOL*NC, POOL)
    gsum_np = np.zeros((B * NC, B * POOL * NC), np.float32)
    for b in range(B):
        for n in range(NC):
            for p in range(POOL):
                gsum_np[b * NC + n, b * POOL * NC + p * NC + n] = 1.0

    consts = jnp.zeros((R_TOT, 128), jnp.float32)
    consts = consts.at[R_FCAT:R_FCAT + B * POOL * NC, :B * COUT].set(fcat_bd)
    consts = consts.at[R_GSUM:R_GSUM + B * NC, :B * POOL * NC].set(jnp.asarray(gsum_np))
    consts = consts.at[R_DMASK:R_DMASK + B * POOL * NC, :POOL].set(jnp.asarray(dmask_bd))
    consts = consts.at[R_POOLM:R_POOLM + LOUT, :POOL].set(jnp.asarray(poolm_np))
    consts = consts.at[R_BCONV:R_BCONV + B * COUT, 0].set(jnp.tile(conv_b, B))
    consts = consts.at[R_FCB:R_FCB + B * NC, 0].set(jnp.tile(fc_b, B))

    out = pl.pallas_call(
        mcn_wfk_kernel,
        out_shape=jax.ShapeDtypeStruct((B * NC, 1), jnp.float32),
        grid_spec=pltpu.PrefetchScalarGridSpec(
            num_scalar_prefetch=0,
            grid=(1,),                                      # whole batch, one step
            in_specs=[
                pl.BlockSpec((2 * ROWS, L), lambda i: (0, 0)),
                pl.BlockSpec((KS, L, LOUT), lambda i: (0, 0, 0)),
                pl.BlockSpec((KS, B * COUT, B * CIN), lambda i: (0, 0, 0)),
                pl.BlockSpec((R_TOT, 128), lambda i: (0, 0)),
            ],
            out_specs=pl.BlockSpec((B * NC, 1), lambda i: (0, 0)),
        ),
        compiler_params=pltpu.CompilerParams(
            dimension_semantics=("arbitrary",)),
    )(xe, selT, wkbd, consts)
    return out.reshape(B, NC)


def reference_forward(x_bcl, filters, conv_w, conv_b, fc_w, fc_b):
    """Pure-JAX reference mirroring the PyTorch forward (NCL layout)."""
    parts = []
    for c in range(C):
        rem = x_bcl[:, c:c + 1, :]                          # (B, 1, L)
        for ii in range(NUM):
            cur = rem * filters[c, ii][None, None, :]
            parts.append(cur)
            rem = rem - cur
    y = jnp.concatenate(parts, axis=1)                      # (B, CIN, L)
    conv = lax.conv_general_dilated(
        y, conv_w, window_strides=(STRIDE,), padding=[(PAD, PAD)],
        dimension_numbers=('NCH', 'OIH', 'NCH'))
    conv = conv + conv_b[None, :, None]
    conv = jnp.maximum(conv, 0.0)
    poolM = np.zeros((LOUT, POOL), np.float32)
    for i in range(POOL):
        s = (i * LOUT) // POOL
        e = -(-((i + 1) * LOUT) // POOL)
        poolM[s:e, i] = 1.0 / (e - s)
    pooled = jnp.einsum('bct,tp->bcp', conv, jnp.asarray(poolM))   # (B, COUT, POOL)
    feat = pooled.reshape(B, -1)
    return feat @ fc_w.T + fc_b


if __name__ == "__main__":
    key = jax.random.PRNGKey(0)
    kx, kw, kb, kfw, kfb = jax.random.split(key, 5)

    # ff array (len(ff) == signal length L), used only via linspace parameters.
    ff = np.linspace(0.0, 5000.0, L).astype(np.float32)

    # Wiener_fast parameters, exactly as in __init__ (deterministic linspaces).
    fc_param = np.linspace(0.0, ff[-1], NUM, dtype=np.float32).reshape(NUM, 1)
    alpha = np.linspace(25000.0, 15000.0, NUM, dtype=np.float32).reshape(NUM, 1)
    w_freq = np.linspace(0.0, ff[-1], L, dtype=np.float32).reshape(1, L)
    filt_single = 1.0 / (1.0 + 2.0 * alpha * (w_freq - fc_param) ** 2)   # (NUM, L)
    filters = jnp.asarray(np.broadcast_to(filt_single, (C, NUM, L)).copy())

    # Conv1d / Linear parameters (deterministic synthetic init).
    conv_w = jax.random.uniform(kw, (COUT, CIN, KS), jnp.float32, -1.0, 1.0) / np.sqrt(CIN * KS)
    conv_b = jax.random.uniform(kb, (COUT,), jnp.float32, -1.0, 1.0) / np.sqrt(CIN * KS)
    fc_w = jax.random.uniform(kfw, (NC, COUT * POOL), jnp.float32, -1.0, 1.0) / np.sqrt(COUT * POOL)
    fc_b = jax.random.uniform(kfb, (NC,), jnp.float32, -1.0, 1.0) / np.sqrt(COUT * POOL)

    x = jax.random.normal(kx, (B, C, L), jnp.float32)

    out = jax.block_until_ready(mcn_wfk_forward(x, filters, conv_w, conv_b, fc_w, fc_b))
    ref = jax.block_until_ready(reference_forward(x, filters, conv_w, conv_b, fc_w, fc_b))
    np.testing.assert_allclose(np.asarray(out), np.asarray(ref), rtol=1e-3, atol=1e-4)
    print("KERNEL_OK")
</pallas_src>

<mosaic_0001>
module attributes {stable_mosaic.version = 11 : i64} {
  func.func @mcn_wfk_kernel(%arg0: i32, %arg1: memref<64x128xf32, #tpu.memory_space<vmem>>, %arg2: memref<7x128x42xf32, #tpu.memory_space<vmem>>, %arg3: memref<7x128x32xf32, #tpu.memory_space<vmem>>, %arg4: memref<416x128xf32, #tpu.memory_space<vmem>>, %arg5: memref<10x1xf32, #tpu.memory_space<vmem>>) attributes {dimension_semantics = [#tpu.dimension_semantics<arbitrary>], iteration_bounds = array<i64: 1>, scalar_prefetch = 0 : i64, scratch_operands = 0 : i64, tpu.core_type = #tpu.core_type<tc>, window_params = [{pipeline_mode = #tpu.pipeline_mode<synchronous>, transform_indices = @transform_0, window_bounds = array<i64: 64, 128>}, {pipeline_mode = #tpu.pipeline_mode<synchronous>, transform_indices = @transform_1, window_bounds = array<i64: 7, 128, 42>}, {pipeline_mode = #tpu.pipeline_mode<synchronous>, transform_indices = @transform_2, window_bounds = array<i64: 7, 128, 32>}, {pipeline_mode = #tpu.pipeline_mode<synchronous>, transform_indices = @transform_3, window_bounds = array<i64: 416, 128>}, {pipeline_mode = #tpu.pipeline_mode<synchronous>, transform_indices = @transform_4, window_bounds = array<i64: 10, 1>}]} {
    %c0 = arith.constant 0 : index
    %c0_0 = arith.constant 0 : index
    %0 = vector.load %arg1[%c0, %c0_0] : memref<64x128xf32, #tpu.memory_space<vmem>>, vector<32x128xf32>
    %c32 = arith.constant 32 : index
    %c0_1 = arith.constant 0 : index
    %1 = vector.load %arg1[%c32, %c0_1] : memref<64x128xf32, #tpu.memory_space<vmem>>, vector<32x128xf32>
    %2 = arith.mulf %0, %1 : vector<32x128xf32>
    %c0_2 = arith.constant 0 : index
    %c0_3 = arith.constant 0 : index
    %c0_4 = arith.constant 0 : index
    %3 = vector.load %arg2[%c0_2, %c0_3, %c0_4] : memref<7x128x42xf32, #tpu.memory_space<vmem>>, vector<1x128x42xf32>
    %4 = vector.shape_cast %3 : vector<1x128x42xf32> to vector<128x42xf32>
    %cst = arith.constant dense<0.000000e+00> : vector<32x42xf32>
    %5 = tpu.matmul %2, %4, %cst {dimension_numbers = #tpu.dot_dimension_numbers<[1], [0], [0], [1], [0, 0, 1, 1], [], []>} : vector<32x128xf32>, vector<128x42xf32>, vector<32x42xf32> -> vector<32x42xf32>
    %c0_5 = arith.constant 0 : index
    %c0_6 = arith.constant 0 : index
    %c0_7 = arith.constant 0 : index
    %6 = vector.load %arg3[%c0_5, %c0_6, %c0_7] : memref<7x128x32xf32, #tpu.memory_space<vmem>>, vector<1x128x32xf32>
    %7 = vector.shape_cast %6 : vector<1x128x32xf32> to vector<128x32xf32>
    %cst_8 = arith.constant dense<0.000000e+00> : vector<128x42xf32>
    %8 = tpu.matmul %7, %5, %cst_8 {dimension_numbers = #tpu.dot_dimension_numbers<[1], [0], [0], [1], [0, 0, 1, 1], [], []>} : vector<128x32xf32>, vector<32x42xf32>, vector<128x42xf32> -> vector<128x42xf32>
    %c1 = arith.constant 1 : index
    %c0_9 = arith.constant 0 : index
    %c0_10 = arith.constant 0 : index
    %9 = vector.load %arg2[%c1, %c0_9, %c0_10] : memref<7x128x42xf32, #tpu.memory_space<vmem>>, vector<1x128x42xf32>
    %10 = vector.shape_cast %9 : vector<1x128x42xf32> to vector<128x42xf32>
    %cst_11 = arith.constant dense<0.000000e+00> : vector<32x42xf32>
    %11 = tpu.matmul %2, %10, %cst_11 {dimension_numbers = #tpu.dot_dimension_numbers<[1], [0], [0], [1], [0, 0, 1, 1], [], []>} : vector<32x128xf32>, vector<128x42xf32>, vector<32x42xf32> -> vector<32x42xf32>
    %c1_12 = arith.constant 1 : index
    %c0_13 = arith.constant 0 : index
    %c0_14 = arith.constant 0 : index
    %12 = vector.load %arg3[%c1_12, %c0_13, %c0_14] : memref<7x128x32xf32, #tpu.memory_space<vmem>>, vector<1x128x32xf32>
    %13 = vector.shape_cast %12 : vector<1x128x32xf32> to vector<128x32xf32>
    %cst_15 = arith.constant dense<0.000000e+00> : vector<128x42xf32>
    %14 = tpu.matmul %13, %11, %cst_15 {dimension_numbers = #tpu.dot_dimension_numbers<[1], [0], [0], [1], [0, 0, 1, 1], [], []>} : vector<128x32xf32>, vector<32x42xf32>, vector<128x42xf32> -> vector<128x42xf32>
    %15 = arith.addf %8, %14 : vector<128x42xf32>
    %c2 = arith.constant 2 : index
    %c0_16 = arith.constant 0 : index
    %c0_17 = arith.constant 0 : index
    %16 = vector.load %arg2[%c2, %c0_16, %c0_17] : memref<7x128x42xf32, #tpu.memory_space<vmem>>, vector<1x128x42xf32>
    %17 = vector.shape_cast %16 : vector<1x128x42xf32> to vector<128x42xf32>
    %cst_18 = arith.constant dense<0.000000e+00> : vector<32x42xf32>
    %18 = tpu.matmul %2, %17, %cst_18 {dimension_numbers = #tpu.dot_dimension_numbers<[1], [0], [0], [1], [0, 0, 1, 1], [], []>} : vector<32x128xf32>, vector<128x42xf32>, vector<32x42xf32> -> vector<32x42xf32>
    %c2_19 = arith.constant 2 : index
    %c0_20 = arith.constant 0 : index
    %c0_21 = arith.constant 0 : index
    %19 = vector.load %arg3[%c2_19, %c0_20, %c0_21] : memref<7x128x32xf32, #tpu.memory_space<vmem>>, vector<1x128x32xf32>
    %20 = vector.shape_cast %19 : vector<1x128x32xf32> to vector<128x32xf32>
    %cst_22 = arith.constant dense<0.000000e+00> : vector<128x42xf32>
    %21 = tpu.matmul %20, %18, %cst_22 {dimension_numbers = #tpu.dot_dimension_numbers<[1], [0], [0], [1], [0, 0, 1, 1], [], []>} : vector<128x32xf32>, vector<32x42xf32>, vector<128x42xf32> -> vector<128x42xf32>
    %22 = arith.addf %15, %21 : vector<128x42xf32>
    %c3 = arith.constant 3 : index
    %c0_23 = arith.constant 0 : index
    %c0_24 = arith.constant 0 : index
    %23 = vector.load %arg2[%c3, %c0_23, %c0_24] : memref<7x128x42xf32, #tpu.memory_space<vmem>>, vector<1x128x42xf32>
    %24 = vector.shape_cast %23 : vector<1x128x42xf32> to vector<128x42xf32>
    %cst_25 = arith.constant dense<0.000000e+00> : vector<32x42xf32>
    %25 = tpu.matmul %2, %24, %cst_25 {dimension_numbers = #tpu.dot_dimension_numbers<[1], [0], [0], [1], [0, 0, 1, 1], [], []>} : vector<32x128xf32>, vector<128x42xf32>, vector<32x42xf32> -> vector<32x42xf32>
    %c3_26 = arith.constant 3 : index
    %c0_27 = arith.constant 0 : index
    %c0_28 = arith.constant 0 : index
    %26 = vector.load %arg3[%c3_26, %c0_27, %c0_28] : memref<7x128x32xf32, #tpu.memory_space<vmem>>, vector<1x128x32xf32>
    %27 = vector.shape_cast %26 : vector<1x128x32xf32> to vector<128x32xf32>
    %cst_29 = arith.constant dense<0.000000e+00> : vector<128x42xf32>
    %28 = tpu.matmul %27, %25, %cst_29 {dimension_numbers = #tpu.dot_dimension_numbers<[1], [0], [0], [1], [0, 0, 1, 1], [], []>} : vector<128x32xf32>, vector<32x42xf32>, vector<128x42xf32> -> vector<128x42xf32>
    %29 = arith.addf %22, %28 : vector<128x42xf32>
    %c4 = arith.constant 4 : index
    %c0_30 = arith.constant 0 : index
    %c0_31 = arith.constant 0 : index
    %30 = vector.load %arg2[%c4, %c0_30, %c0_31] : memref<7x128x42xf32, #tpu.memory_space<vmem>>, vector<1x128x42xf32>
    %31 = vector.shape_cast %30 : vector<1x128x42xf32> to vector<128x42xf32>
    %cst_32 = arith.constant dense<0.000000e+00> : vector<32x42xf32>
    %32 = tpu.matmul %2, %31, %cst_32 {dimension_numbers = #tpu.dot_dimension_numbers<[1], [0], [0], [1], [0, 0, 1, 1], [], []>} : vector<32x128xf32>, vector<128x42xf32>, vector<32x42xf32> -> vector<32x42xf32>
    %c4_33 = arith.constant 4 : index
    %c0_34 = arith.constant 0 : index
    %c0_35 = arith.constant 0 : index
    %33 = vector.load %arg3[%c4_33, %c0_34, %c0_35] : memref<7x128x32xf32, #tpu.memory_space<vmem>>, vector<1x128x32xf32>
    %34 = vector.shape_cast %33 : vector<1x128x32xf32> to vector<128x32xf32>
    %cst_36 = arith.constant dense<0.000000e+00> : vector<128x42xf32>
    %35 = tpu.matmul %34, %32, %cst_36 {dimension_numbers = #tpu.dot_dimension_numbers<[1], [0], [0], [1], [0, 0, 1, 1], [], []>} : vector<128x32xf32>, vector<32x42xf32>, vector<128x42xf32> -> vector<128x42xf32>
    %36 = arith.addf %29, %35 : vector<128x42xf32>
    %c5 = arith.constant 5 : index
    %c0_37 = arith.constant 0 : index
    %c0_38 = arith.constant 0 : index
    %37 = vector.load %arg2[%c5, %c0_37, %c0_38] : memref<7x128x42xf32, #tpu.memory_space<vmem>>, vector<1x128x42xf32>
    %38 = vector.shape_cast %37 : vector<1x128x42xf32> to vector<128x42xf32>
    %cst_39 = arith.constant dense<0.000000e+00> : vector<32x42xf32>
    %39 = tpu.matmul %2, %38, %cst_39 {dimension_numbers = #tpu.dot_dimension_numbers<[1], [0], [0], [1], [0, 0, 1, 1], [], []>} : vector<32x128xf32>, vector<128x42xf32>, vector<32x42xf32> -> vector<32x42xf32>
    %c5_40 = arith.constant 5 : index
    %c0_41 = arith.constant 0 : index
    %c0_42 = arith.constant 0 : index
    %40 = vector.load %arg3[%c5_40, %c0_41, %c0_42] : memref<7x128x32xf32, #tpu.memory_space<vmem>>, vector<1x128x32xf32>
    %41 = vector.shape_cast %40 : vector<1x128x32xf32> to vector<128x32xf32>
    %cst_43 = arith.constant dense<0.000000e+00> : vector<128x42xf32>
    %42 = tpu.matmul %41, %39, %cst_43 {dimension_numbers = #tpu.dot_dimension_numbers<[1], [0], [0], [1], [0, 0, 1, 1], [], []>} : vector<128x32xf32>, vector<32x42xf32>, vector<128x42xf32> -> vector<128x42xf32>
    %43 = arith.addf %36, %42 : vector<128x42xf32>
    %c6 = arith.constant 6 : index
    %c0_44 = arith.constant 0 : index
    %c0_45 = arith.constant 0 : index
    %44 = vector.load %arg2[%c6, %c0_44, %c0_45] : memref<7x128x42xf32, #tpu.memory_space<vmem>>, vector<1x128x42xf32>
    %45 = vector.shape_cast %44 : vector<1x128x42xf32> to vector<128x42xf32>
    %cst_46 = arith.constant dense<0.000000e+00> : vector<32x42xf32>
    %46 = tpu.matmul %2, %45, %cst_46 {dimension_numbers = #tpu.dot_dimension_numbers<[1], [0], [0], [1], [0, 0, 1, 1], [], []>} : vector<32x128xf32>, vector<128x42xf32>, vector<32x42xf32> -> vector<32x42xf32>
    %c6_47 = arith.constant 6 : index
    %c0_48 = arith.constant 0 : index
    %c0_49 = arith.constant 0 : index
    %47 = vector.load %arg3[%c6_47, %c0_48, %c0_49] : memref<7x128x32xf32, #tpu.memory_space<vmem>>, vector<1x128x32xf32>
    %48 = vector.shape_cast %47 : vector<1x128x32xf32> to vector<128x32xf32>
    %cst_50 = arith.constant dense<0.000000e+00> : vector<128x42xf32>
    %49 = tpu.matmul %48, %46, %cst_50 {dimension_numbers = #tpu.dot_dimension_numbers<[1], [0], [0], [1], [0, 0, 1, 1], [], []>} : vector<128x32xf32>, vector<32x42xf32>, vector<128x42xf32> -> vector<128x42xf32>
    %50 = arith.addf %43, %49 : vector<128x42xf32>
    %c272 = arith.constant 272 : index
    %c0_51 = arith.constant 0 : index
    %51 = vector.load %arg4[%c272, %c0_51] : memref<416x128xf32, #tpu.memory_space<vmem>>, vector<128x1xf32>
    %52 = vector.broadcast %51 : vector<128x1xf32> to vector<128x42xf32>
    %53 = arith.addf %50, %52 : vector<128x42xf32>
    %cst_52 = arith.constant 0.000000e+00 : f32
    %54 = vector.broadcast %cst_52 : f32 to vector<128x42xf32>
    %55 = arith.maximumf %53, %54 : vector<128x42xf32>
    %c224 = arith.constant 224 : index
    %c0_53 = arith.constant 0 : index
    %56 = vector.load %arg4[%c224, %c0_53] : memref<416x128xf32, #tpu.memory_space<vmem>>, vector<42x10xf32>
    %cst_54 = arith.constant dense<0.000000e+00> : vector<128x10xf32>
    %57 = tpu.matmul %55, %56, %cst_54 {dimension_numbers = #tpu.dot_dimension_numbers<[1], [0], [0], [1], [0, 0, 1, 1], [], []>} : vector<128x42xf32>, vector<42x10xf32>, vector<128x10xf32> -> vector<128x10xf32>
    %c0_55 = arith.constant 0 : index
    %c0_56 = arith.constant 0 : index
    %58 = vector.load %arg4[%c0_55, %c0_56] : memref<416x128xf32, #tpu.memory_space<vmem>>, vector<100x128xf32>
    %cst_57 = arith.constant dense<0.000000e+00> : vector<100x10xf32>
    %59 = tpu.matmul %58, %57, %cst_57 {dimension_numbers = #tpu.dot_dimension_numbers<[1], [0], [0], [1], [0, 0, 1, 1], [], []>} : vector<100x128xf32>, vector<128x10xf32>, vector<100x10xf32> -> vector<100x10xf32>
    %c120 = arith.constant 120 : index
    %c0_58 = arith.constant 0 : index
    %60 = vector.load %arg4[%c120, %c0_58] : memref<416x128xf32, #tpu.memory_space<vmem>>, vector<100x10xf32>
    %c104 = arith.constant 104 : index
    %c0_59 = arith.constant 0 : index
    %61 = vector.load %arg4[%c104, %c0_59] : memref<416x128xf32, #tpu.memory_space<vmem>>, vector<10x100xf32>
    %62 = arith.mulf %59, %60 : vector<100x10xf32>
    %cst_60 = arith.constant dense<0.000000e+00> : vector<10x10xf32>
    %63 = tpu.matmul %61, %62, %cst_60 {dimension_numbers = #tpu.dot_dimension_numbers<[1], [0], [0], [1], [0, 0, 1, 1], [], []>} : vector<10x100xf32>, vector<100x10xf32>, vector<10x10xf32> -> vector<10x10xf32>
    %c400 = arith.constant 400 : index
    %c0_61 = arith.constant 0 : index
    %64 = vector.load %arg4[%c400, %c0_61] : memref<416x128xf32, #tpu.memory_space<vmem>>, vector<10x1xf32>
    %cst_62 = arith.constant dense<0.000000e+00> : vector<10xf32>
    %65 = vector.multi_reduction <add>, %63, %cst_62 [1] : vector<10x10xf32> to vector<10xf32>
    %66 = vector.shape_cast %65 : vector<10xf32> to vector<10x1xf32>
    %67 = arith.addf %66, %64 : vector<10x1xf32>
    %c0_63 = arith.constant 0 : index
    %c0_64 = arith.constant 0 : index
    %68 = vector.load %arg5[%c0_63, %c0_64] : memref<10x1xf32, #tpu.memory_space<vmem>>, vector<10x1xf32>
    tpu.vector_store %arg5[%c0_63, %c0_64], %67 {strides = array<i32>} : memref<10x1xf32, #tpu.memory_space<vmem>>, vector<10x1xf32>,
    return
  }
  func.func @transform_0(%arg0: i32) -> (i32, i32) {
    %c0_i32 = arith.constant 0 : i32
    %c0_i32_0 = arith.constant 0 : i32
    %c0_i32_1 = arith.constant 0 : i32
    return %c0_i32, %c0_i32_0 : i32, i32
  }
  func.func @transform_1(%arg0: i32) -> (i32, i32, i32) {
    %c0_i32 = arith.constant 0 : i32
    %c0_i32_0 = arith.constant 0 : i32
    %c0_i32_1 = arith.constant 0 : i32
    %c0_i32_2 = arith.constant 0 : i32
    return %c0_i32, %c0_i32_0, %c0_i32_1 : i32, i32, i32
  }
  func.func @transform_2(%arg0: i32) -> (i32, i32, i32) {
    %c0_i32 = arith.constant 0 : i32
    %c0_i32_0 = arith.constant 0 : i32
    %c0_i32_1 = arith.constant 0 : i32
    %c0_i32_2 = arith.constant 0 : i32
    return %c0_i32, %c0_i32_0, %c0_i32_1 : i32, i32, i32
  }
  func.func @transform_3(%arg0: i32) -> (i32, i32) {
    %c0_i32 = arith.constant 0 : i32
    %c0_i32_0 = arith.constant 0 : i32
    %c0_i32_1 = arith.constant 0 : i32
    return %c0_i32, %c0_i32_0 : i32, i32
  }
  func.func @transform_4(%arg0: i32) -> (i32, i32) {
    %c0_i32 = arith.constant 0 : i32
    %c0_i32_0 = arith.constant 0 : i32
    %c0_i32_1 = arith.constant 0 : i32
    return %c0_i32, %c0_i32_0 : i32, i32
  }
}

</mosaic_0001>

<bundles_post_ra>
// kernel: tpu_custom_call.1
= control target key start
LH: loop header
LB: loop body
LE: loop exit
PB: predicated region body
PF: predicated region fallthrough
CT: control target
= control target key end

     0   :  { %vm265_vm0 = vcmask 261120   ;;  %vm2475_vm1 = vcmask 1041408   ;;  %vm4647_vm2 = vmmov 1   ;;  %vm2426_vm4 = vcmask 343040   ;;  %s5888_s1 = inlined_call_operand.vmem [shape: f32[7,128,42], index: 1, kind: input, shape index: {}]   ;;  %s5889_s0 = inlined_call_operand.vmem [shape: f32[64,128], index: 0, kind: input, shape index: {}]   ;;  %s5890_s2 = inlined_call_operand.vmem [shape: f32[7,128,32], index: 2, kind: input, shape index: {}]   ;;  %s5891_s3 = inlined_call_operand.vmem [shape: f32[416,128], index: 3, kind: input, shape index: {}]   ;;  %s5892_s4 = inlined_call_operand.vmem [shape: f32[10,1], index: 4, kind: output, shape index: {}]  }
   0x1   :  { %v29_v0 = vld [vmem:[%s5888_s1] sm:$0xff]  ;;  %v30_v1 = vld [vmem:[%s5888_s1 + $0x8] sm:$0xff]  ;;  %v31_v2 = vld [vmem:[%s5888_s1 + $0x10] sm:$0xff]  ;;  %vm4649_vm5 = vmmov 0   ;;  %vm2795_vm6 = vcmask 818176   ;;  %vm2802_vm7 = vcmask 1043456  }
   0x2   :  { %v4197_v3 = vpack.c.bf16 %v30_v1, %v29_v0  ;;  %v32_v4 = vld [vmem:[%s5888_s1 + $0x18] sm:$0xff]  ;;  %v33_v6 = vld [vmem:[%s5888_s1 + $0x20] sm:$0xff]  ;;  %v34_v7 = vld [vmem:[%s5888_s1 + $0x28] sm:$0xff]  ;;  %vm2887_vm8 = vcmask 74752   ;;  %vm2883_vm9 = vcmask 80896   ;;  %vm2895_vm10 = vcmask 1024  }
   0x3   :  { %v4201_v5 = vpack.c.bf16 %v32_v4, %v31_v2  ;;  %v4205_v8 = vpack.c.bf16 %v34_v7, %v33_v6  ;;  %v17_v9 = vld [vmem:[%s5889_s0] sm:$0xff]  ;;  %v35_v11 = vld [vmem:[%s5888_s1 + $0x30] sm:$0xff]  ;;  %v36_v12 = vld [vmem:[%s5888_s1 + $0x38] sm:$0xff]  ;;  %vm2893_vm11 = vcmask 7168  }
   0x4   :  { %4198 = vmatprep.subr.bf16.mxu0 %v4197_v3  ;;  %v21_v10 = vld [vmem:[%s5889_s0 + $0x20] sm:$0xff]  ;;  %v4209_v14 = vpack.c.bf16 %v36_v12, %v35_v11  ;;  %v38_v16 = vld [vmem:[%s5888_s1 + $0x48] sm:$0xff]  ;;  %v39_v18 = vld [vmem:[%s5888_s1 + $0x50] sm:$0xff] }
   0x5   :  { %4200 = vmatpush3.bf16.msra.mxu0 %v4197_v3  ;;  %v4706_v13 = vmul.f32 %v21_v10, %v17_v9  ;;  %v37_v15 = vld [vmem:[%s5888_s1 + $0x40] sm:$0xff]  ;;  %v40_v19 = vld [vmem:[%s5888_s1 + $0x58] sm:$0xff]  ;;  %v42_v22 = vld [vmem:[%s5888_s1 + $0x68] sm:$0xff] }
   0x6   :  { %4202 = vmatprep.subr.bf16.mxu0 %v4201_v5  ;;  %v4213_v17 = vpack.c.bf16 %v38_v16, %v37_v15  ;;  %v4217_v20 = vpack.c.bf16 %v40_v19, %v39_v18  ;;  %v41_v21 = vld [vmem:[%s5888_s1 + $0x60] sm:$0xff]  ;;  %v43_v24 = vld [vmem:[%s5888_s1 + $0x70] sm:$0xff]  ;;  %v44_v25 = vld [vmem:[%s5888_s1 + $0x78] sm:$0xff] }
   0x7   :  { %3603 = vmatprep.mubr.f32.mxu0 %v4706_v13  ;;  %3641 = vmatprep.mubr.f32.mxu1 %v4706_v13  ;;  %v4221_v23 = vpack.c.bf16 %v42_v22, %v41_v21  ;;  %v4225_v26 = vpack.c.bf16 %v44_v25, %v43_v24  ;;  %v18_v27 = vld [vmem:[%s5889_s0 + $0x8] sm:$0xff]  ;;  %v19_v29 = vld [vmem:[%s5889_s0 + $0x10] sm:$0xff]  ;;  %v20_v33 = vld [vmem:[%s5889_s0 + $0x18] sm:$0xff] }
   0x8   :  { %v22_v28 = vld [vmem:[%s5889_s0 + $0x28] sm:$0xff]  ;;  %v23_v30 = vld [vmem:[%s5889_s0 + $0x30] sm:$0xff]  ;;  %v24_v34 = vld [vmem:[%s5889_s0 + $0x38] sm:$0xff] }
   0x9   :  { %4204 = vmatpush3.bf16.msra.mxu0 %v4201_v5  ;;  %v4746_v31 = vmul.f32 %v22_v28, %v18_v27  ;;  %v4748_v32 = vmul.f32 %v23_v30, %v19_v29  ;;  %v4757_v35 = vmul.f32 %v24_v34, %v20_v33  ;;  %v130_v36 = vld [vmem:[%s5890_s2] sm:$0xff]  ;;  %v2902_v38 = vld [vmem:[%s5888_s1 + $0x88] sm:$0xff]  ;;  %v2903_v40 = vld [vmem:[%s5888_s1 + $0x90] sm:$0xff] }
   0xa   :  { %4206 = vmatprep.subr.bf16.mxu0 %v4205_v8  ;;  %v2901_v37 = vld [vmem:[%s5888_s1 + $0x80] sm:$0xff]  ;;  %v2904_v41 = vld [vmem:[%s5888_s1 + $0x98] sm:$0xff]  ;;  %v2906_v44 = vld [vmem:[%s5888_s1 + $0xa8] sm:$0xff] }
   0xb   :  { %v4229_v39 = vpack.c.bf16 %v2902_v38, %v2901_v37  ;;  %v4233_v42 = vpack.c.bf16 %v2904_v41, %v2903_v40  ;;  %v2905_v43 = vld [vmem:[%s5888_s1 + $0xa0] sm:$0xff]  ;;  %v2907_v46 = vld [vmem:[%s5888_s1 + $0xb0] sm:$0xff]  ;;  %v2908_v47 = vld [vmem:[%s5888_s1 + $0xb8] sm:$0xff] }
   0xc   :  { %v4237_v45 = vpack.c.bf16 %v2906_v44, %v2905_v43  ;;  %v4241_v48 = vpack.c.bf16 %v2908_v47, %v2907_v46  ;;  %v2909_v49 = vld [vmem:[%s5888_s1 + $0xc0] sm:$0xff]  ;;  %v2910_v50 = vld [vmem:[%s5888_s1 + $0xc8] sm:$0xff]  ;;  %v2911_v52 = vld [vmem:[%s5888_s1 + $0xd0] sm:$0xff] }
   0xd   :  { %4208 = vmatpush3.bf16.msra.mxu0 %v4205_v8  ;;  %4230 = vmatprep.subr.bf16.mxu1 %v4229_v39  ;;  %v4245_v51 = vpack.c.bf16 %v2910_v50, %v2909_v49  ;;  %v2912_v53 = vld [vmem:[%s5888_s1 + $0xd8] sm:$0xff]  ;;  %v2913_v55 = vld [vmem:[%s5888_s1 + $0xe0] sm:$0xff]  ;;  %v2914_v56 = vld [vmem:[%s5888_s1 + $0xe8] sm:$0xff] }
   0xe   :  { %4210 = vmatprep.subr.bf16.mxu0 %v4209_v14  ;;  %4232 = vmatpush3.bf16.msra.mxu1 %v4229_v39  ;;  %v4249_v54 = vpack.c.bf16 %v2912_v53, %v2911_v52  ;;  %v4253_v57 = vpack.c.bf16 %v2914_v56, %v2913_v55  ;;  %v2915_v58 = vld [vmem:[%s5888_s1 + $0xf0] sm:$0xff]  ;;  %v2916_v59 = vld [vmem:[%s5888_s1 + $0xf8] sm:$0xff]  ;;  %v2965_v0 = vld [vmem:[%s5888_s1 + $0x100] sm:$0xff] }
   0xf   :  { %4234 = vmatprep.subr.bf16.mxu1 %v4233_v42  ;;  %v4257_v60 = vpack.c.bf16 %v2916_v59, %v2915_v58  ;;  %v2966_v1 = vld [vmem:[%s5888_s1 + $0x108] sm:$0xff]  ;;  %v2967_v6 = vld [vmem:[%s5888_s1 + $0x110] sm:$0xff]  ;;  %v2968_v7 = vld [vmem:[%s5888_s1 + $0x118] sm:$0xff] }
  0x10   :  { %v4277_v5 = vpack.c.bf16 %v2966_v1, %v2965_v0  ;;  %v131_v8 = vld [vmem:[%s5890_s2 + $0x8] sm:$0xff]  ;;  %v132_v9 = vld [vmem:[%s5890_s2 + $0x10] sm:$0xff]  ;;  %v4281_v10 = vpack.c.bf16 %v2968_v7, %v2967_v6  ;;  %v2969_v11 = vld [vmem:[%s5888_s1 + $0x120] sm:$0xff] }
  0x11   :  { %4212 = vmatpush3.bf16.msra.mxu0 %v4209_v14  ;;  %v2970_v12 = vld [vmem:[%s5888_s1 + $0x128] sm:$0xff]  ;;  %v133_v14 = vld [vmem:[%s5890_s2 + $0x18] sm:$0xff]  ;;  %v134_v15 = vld [vmem:[%s5890_s2 + $0x20] sm:$0xff] }
  0x12   :  { %4214 = vmatprep.subr.bf16.mxu0 %v4213_v17  ;;  %4236 = vmatpush3.bf16.msra.mxu1 %v4233_v42  ;;  %v4285_v16 = vpack.c.bf16 %v2970_v12, %v2969_v11  ;;  %v2972_v18 = vld [vmem:[%s5888_s1 + $0x138] sm:$0xff]  ;;  %v135_v19 = vld [vmem:[%s5890_s2 + $0x28] sm:$0xff]  ;;  %v2973_v22 = vld [vmem:[%s5888_s1 + $0x140] sm:$0xff] }
  0x13   :  { %4238 = vmatprep.subr.bf16.mxu1 %v4237_v45  ;;  %v137_v24 = vld [vmem:[%s5890_s2 + $0x38] sm:$0xff]  ;;  %v138_v25 = vld [vmem:[%s5890_s2 + $0x40] sm:$0xff]  ;;  %v2975_v27 = vld [vmem:[%s5888_s1 + $0x150] sm:$0xff] }
  0x14   :  { %v2976_v28 = vld [vmem:[%s5888_s1 + $0x158] sm:$0xff]  ;;  %v139_v29 = vld [vmem:[%s5890_s2 + $0x48] sm:$0xff]  ;;  %v140_v30 = vld [vmem:[%s5890_s2 + $0x50] sm:$0xff] }
  0x15   :  { %4216 = vmatpush3.bf16.msra.mxu0 %v4213_v17  ;;  %v2971_v17 = vld [vmem:[%s5888_s1 + $0x130] sm:$0xff]  ;;  %v4297_v33 = vpack.c.bf16 %v2976_v28, %v2975_v27  ;;  %v2977_v34 = vld [vmem:[%s5888_s1 + $0x160] sm:$0xff]  ;;  %v141_v37 = vld [vmem:[%s5890_s2 + $0x58] sm:$0xff] }
  0x16   :  { %4218 = vmatprep.subr.bf16.mxu0 %v4217_v20  ;;  %4240 = vmatpush3.bf16.msra.mxu1 %v4237_v45  ;;  %v4289_v21 = vpack.c.bf16 %v2972_v18, %v2971_v17  ;;  %v142_v38 = vld [vmem:[%s5890_s2 + $0x60] sm:$0xff]  ;;  %v2979_v40 = vld [vmem:[%s5888_s1 + $0x170] sm:$0xff]  ;;  %v2980_v41 = vld [vmem:[%s5888_s1 + $0x178] sm:$0xff] }
  0x17   :  { %4242 = vmatprep.subr.bf16.mxu1 %v4241_v48  ;;  %v143_v42 = vld [vmem:[%s5890_s2 + $0x68] sm:$0xff]  ;;  %v144_v43 = vld [vmem:[%s5890_s2 + $0x70] sm:$0xff]  ;;  %v4305_v44 = vpack.c.bf16 %v2980_v41, %v2979_v40  ;;  %v145_v45 = vld [vmem:[%s5890_s2 + $0x78] sm:$0xff] }
  0x18   :  { %v2981_v52 = vld [vmem:[%s5890_s2 + $0x100] sm:$0xff]  ;;  %v3063_v58 = vld [vmem:[%s5888_s1 + $0x210] sm:$0xff]  ;;  %v3064_v59 = vld [vmem:[%s5888_s1 + $0x218] sm:$0xff] }
  0x19   :  { %4220 = vmatpush3.bf16.msra.mxu0 %v4217_v20  ;;  %v136_v20 = vld [vmem:[%s5890_s2 + $0x30] sm:$0xff]  ;;  %v3061_v53 = vld [vmem:[%s5888_s1 + $0x200] sm:$0xff]  ;;  %v3066_v0 = vld [vmem:[%s5888_s1 + $0x228] sm:$0xff] }
  0x1a   :  { %4222 = vmatprep.subr.bf16.mxu0 %v4221_v23  ;;  %4244 = vmatpush3.bf16.msra.mxu1 %v4241_v48  ;;  %v2917_v55 = vld [vmem:[%s5890_s2 + $0x80] sm:$0xff]  ;;  %v2923_v6 = vld [vmem:[%s5890_s2 + $0xb0] sm:$0xff]  ;;  %vm4486_vm3 = vmpackc.low %vm2475_vm1, %vm4647_vm2 }
  0x1b   :  { %4246 = vmatprep.subr.bf16.mxu1 %v4245_v51  ;;  %v2921_v1 = vld [vmem:[%s5890_s2 + $0xa0] sm:$0xff]  ;;  %v2927_v17 = vld [vmem:[%s5890_s2 + $0xd0] sm:$0xff] }
  0x1c   :  { %v2925_v11 = vld [vmem:[%s5890_s2 + $0xc0] sm:$0xff]  ;;  %v2931_v27 = vld [vmem:[%s5890_s2 + $0xf0] sm:$0xff] }
  0x1d   :  { %4224 = vmatpush3.bf16.msra.mxu0 %v4221_v23  ;;  %v2974_v23 = vld [vmem:[%s5888_s1 + $0x148] sm:$0xff] }
  0x1e   :  { %4226 = vmatprep.subr.bf16.mxu0 %v4225_v26  ;;  %4248 = vmatpush3.bf16.msra.mxu1 %v4245_v51 }
  0x1f   :  { %4250 = vmatprep.subr.bf16.mxu1 %v4249_v54 }
  0x21   :  { %4228 = vmatpush3.bf16.msra.mxu0 %v4225_v26  ;;  %v4293_v26 = vpack.c.bf16 %v2974_v23, %v2973_v22  ;;  %v2929_v22 = vld [vmem:[%s5890_s2 + $0xe0] sm:$0xff] }
  0x22   :  { %4252 = vmatpush3.bf16.msra.mxu1 %v4249_v54  ;;  %v3062_v54 = vld [vmem:[%s5888_s1 + $0x208] sm:$0xff] }
  0x23   :  { %4254 = vmatprep.subr.bf16.mxu1 %v4253_v57  ;;  %v4357_v56 = vpack.c.bf16 %v3062_v54, %v3061_v53  ;;  %v3020_v53 = vld [vmem:[%s5888_s1 + $0x1b8] sm:$0xff]  ;;  %v2986_v54 = vld [vmem:[%s5890_s2 + $0x128] sm:$0xff] }
  0x24   :  { %3604 = vmatmul.mubr.f32.vlgmr.msra.gmra.mrb[0].mxu0 %v4746_v31 }
  0x25   :  { %3606 = vmatprep.mubr.f32.mxu0 %v4748_v32 }
  0x26   :  { %4256 = vmatpush3.bf16.msra.mxu1 %v4253_v57  ;;  %v2918_v57 = vld [vmem:[%s5890_s2 + $0x88] sm:$0xff] }
  0x27   :  { %4258 = vmatprep.subr.bf16.mxu1 %v4257_v60 }
  0x28   :  { %3607 = vmatmul.mubr.f32.gmra.mrb[2].mxu0 %v4757_v35 }
  0x29   :  { %3687 = vmatprep.mubr.msk.f32.mxu0 %vm265_vm0, %v130_v36  ;;  %v2978_v36 = vld [vmem:[%s5888_s1 + $0x168] sm:$0xff] }
  0x2a   :  { %4260 = vmatpush3.bf16.msra.mxu1 %v4257_v60  ;;  %v4301_v39 = vpack.c.bf16 %v2978_v36, %v2977_v34  ;;  %v2919_v60 = vld [vmem:[%s5890_s2 + $0x90] sm:$0xff]  ;;  %v3013_v36 = vld [vmem:[%s5888_s1 + $0x180] sm:$0xff] }
  0x2d   :  { %3642 = vmatmul.mubr.f32.vlgmr.msra.gmra.mrb[0].mxu1 %v4746_v31 }
  0x2e   :  { %3644 = vmatprep.mubr.f32.mxu1 %v4748_v32 }
  0x31   :  { %3645 = vmatmul.mubr.f32.gmra.mrb[2].mxu1 %v4757_v35 }
  0x32   :  { %3655 = vmatprep.mubr.msk.f32.mxu1 %vm265_vm0, %v2917_v55  ;;  %v2987_v55 = vld [vmem:[%s5890_s2 + $0x130] sm:$0xff] }
  0xf7   :  { %v3605_v61 = vpop.f32.mrb[0].mxu0 }
  0xf8   :  { %v111_v62 = vpop.f32.mrb[1].mxu0 }
  0xf9   :  { %v4269_v63 = vpack.c.bf16 %v3605_v61, %v111_v62  ;;  %v4361_v61 = vpack.c.bf16 %v3064_v59, %v3063_v58  ;;  %v2920_v62 = vld [vmem:[%s5890_s2 + $0x98] sm:$0xff]  ;;  %v3022_v58 = vld [vmem:[%s5888_s1 + $0x1c8] sm:$0xff] }
  0xfa   :  { %v2988_v59 = vld [vmem:[%s5890_s2 + $0x138] sm:$0xff] }
  0xfb   :  { %v3608_v2 = vpop.f32.mrb[2].mxu0  ;;  %4270 = vmatprep.subr.bf16.mxu0 %v4269_v63 }
  0xfc   :  { %v121_v3 = vpop.f32.mrb[3].mxu0  ;;  %4272 = vmatpush3.bf16.msra.mxu0 %v4269_v63  ;;  %v3065_v63 = vld [vmem:[%s5888_s1 + $0x220] sm:$0xff] }
  0xfd   :  { %v4273_v4 = vpack.c.bf16 %v3608_v2, %v121_v3  ;;  %v4365_v2 = vpack.c.bf16 %v3066_v0, %v3065_v63  ;;  %v2922_v3 = vld [vmem:[%s5890_s2 + $0xa8] sm:$0xff]  ;;  %v3024_v63 = vld [vmem:[%s5888_s1 + $0x1d8] sm:$0xff] }
  0xfe   :  { %v2990_v0 = vld [vmem:[%s5890_s2 + $0x148] sm:$0xff] }
  0xff   :  { %4274 = vmatprep.subr.bf16.mxu0 %v4273_v4 }
 0x100   :  { %4276 = vmatpush3.bf16.msra.mxu0 %v4273_v4  ;;  %v3643_v46 = vpop.f32.mrb[0].mxu1  ;;  %v3067_v4 = vld [vmem:[%s5888_s1 + $0x230] sm:$0xff] }
 0x101   :  { %4278 = vmatprep.subr.bf16.mxu0 %v4277_v5  ;;  %v229_v47 = vpop.f32.mrb[1].mxu1 }
 0x102   :  { %v4261_v48 = vpack.c.bf16 %v3643_v46, %v229_v47  ;;  %v3017_v47 = vld [vmem:[%s5888_s1 + $0x1a0] sm:$0xff] }
 0x103   :  { %3688 = vmatmul.mubr.msk.f32.vlgmr.msra.gmra.mrb[4].mxu0 %vm265_vm0, %v131_v8  ;;  %v2924_v8 = vld [vmem:[%s5890_s2 + $0xb8] sm:$0xff] }
 0x104   :  { %4280 = vmatpush3.bf16.msra.mxu0 %v4277_v5  ;;  %3690 = vmatprep.mubr.msk.f32.mxu0 %vm265_vm0, %v132_v9  ;;  %v3646_v49 = vpop.f32.mrb[2].mxu1  ;;  %v3068_v5 = vld [vmem:[%s5888_s1 + $0x238] sm:$0xff]  ;;  %v3069_v9 = vld [vmem:[%s5888_s1 + $0x240] sm:$0xff] }
 0x105   :  { %4282 = vmatprep.subr.bf16.mxu0 %v4281_v10  ;;  %4262 = vmatprep.subr.bf16.mxu1 %v4261_v48  ;;  %v239_v50 = vpop.f32.mrb[3].mxu1  ;;  %v4369_v7 = vpack.c.bf16 %v3068_v5, %v3067_v4  ;;  %v3026_v4 = vld [vmem:[%s5888_s1 + $0x1e8] sm:$0xff]  ;;  %v2992_v5 = vld [vmem:[%s5890_s2 + $0x158] sm:$0xff] }
 0x106   :  { %4264 = vmatpush3.bf16.msra.mxu1 %v4261_v48  ;;  %v4265_v51 = vpack.c.bf16 %v3646_v49, %v239_v50  ;;  %v3018_v48 = vld [vmem:[%s5888_s1 + $0x1a8] sm:$0xff]  ;;  %v2984_v49 = vld [vmem:[%s5890_s2 + $0x118] sm:$0xff]  ;;  %v2985_v50 = vld [vmem:[%s5890_s2 + $0x120] sm:$0xff] }
 0x107   :  { %3691 = vmatmul.mubr.msk.f32.gmra.mrb[6].mxu0 %vm265_vm0, %v133_v14  ;;  %v2926_v14 = vld [vmem:[%s5890_s2 + $0xc8] sm:$0xff] }
 0x108   :  { %4284 = vmatpush3.bf16.msra.mxu0 %v4281_v10  ;;  %3693 = vmatprep.mubr.msk.f32.mxu0 %vm265_vm0, %v134_v15  ;;  %v3070_v10 = vld [vmem:[%s5888_s1 + $0x248] sm:$0xff]  ;;  %v3071_v15 = vld [vmem:[%s5888_s1 + $0x250] sm:$0xff] }
 0x109   :  { %4286 = vmatprep.subr.bf16.mxu0 %v4285_v16  ;;  %4266 = vmatprep.subr.bf16.mxu1 %v4265_v51  ;;  %v4373_v12 = vpack.c.bf16 %v3070_v10, %v3069_v9  ;;  %v3028_v9 = vld [vmem:[%s5888_s1 + $0x1f8] sm:$0xff]  ;;  %v2994_v10 = vld [vmem:[%s5890_s2 + $0x168] sm:$0xff] }
 0x10a   :  { %4268 = vmatpush3.bf16.msra.mxu1 %v4265_v51  ;;  %v4325_v51 = vpack.c.bf16 %v3018_v48, %v3017_v47  ;;  %v3083_v47 = vld [vmem:[%s5890_s2 + $0x230] sm:$0xff]  ;;  %v3084_v48 = vld [vmem:[%s5890_s2 + $0x238] sm:$0xff] }
 0x10b   :  { %3694 = vmatmul.mubr.msk.f32.gmra.mrb[8].mxu0 %vm265_vm0, %v135_v19  ;;  %4358 = vmatprep.subr.bf16.mxu1 %v4357_v56  ;;  %v2928_v19 = vld [vmem:[%s5890_s2 + $0xd8] sm:$0xff] }
 0x10c   :  { %4288 = vmatpush3.bf16.msra.mxu0 %v4285_v16  ;;  %3696 = vmatprep.mubr.msk.f32.mxu0 %vm265_vm0, %v136_v20  ;;  %v3072_v16 = vld [vmem:[%s5888_s1 + $0x258] sm:$0xff]  ;;  %v3073_v20 = vld [vmem:[%s5888_s1 + $0x260] sm:$0xff] }
 0x10d   :  { %4290 = vmatprep.subr.bf16.mxu0 %v4289_v21  ;;  %3656 = vmatmul.mubr.msk.f32.vlgmr.msra.gmra.mrb[4].mxu1 %vm265_vm0, %v2918_v57  ;;  %v4377_v18 = vpack.c.bf16 %v3072_v16, %v3071_v15  ;;  %v3021_v57 = vld [vmem:[%s5888_s1 + $0x1c0] sm:$0xff] }
 0x10e   :  { %4360 = vmatpush3.bf16.msra.mxu1 %v4357_v56  ;;  %3658 = vmatprep.mubr.msk.f32.mxu1 %vm265_vm0, %v2919_v60  ;;  %v2989_v60 = vld [vmem:[%s5890_s2 + $0x140] sm:$0xff] }
 0x10f   :  { %3697 = vmatmul.mubr.msk.f32.gmra.mrb[10].mxu0 %vm265_vm0, %v137_v24  ;;  %4362 = vmatprep.subr.bf16.mxu1 %v4361_v61  ;;  %v2930_v24 = vld [vmem:[%s5890_s2 + $0xe8] sm:$0xff] }
 0x110   :  { %4292 = vmatpush3.bf16.msra.mxu0 %v4289_v21  ;;  %3699 = vmatprep.mubr.msk.f32.mxu0 %vm265_vm0, %v138_v25  ;;  %v3074_v21 = vld [vmem:[%s5888_s1 + $0x268] sm:$0xff]  ;;  %v3075_v25 = vld [vmem:[%s5888_s1 + $0x270] sm:$0xff] }
 0x111   :  { %4294 = vmatprep.subr.bf16.mxu0 %v4293_v26  ;;  %3659 = vmatmul.mubr.msk.f32.gmra.mrb[6].mxu1 %vm265_vm0, %v2920_v62  ;;  %v4381_v23 = vpack.c.bf16 %v3074_v21, %v3073_v20  ;;  %v3023_v62 = vld [vmem:[%s5888_s1 + $0x1d0] sm:$0xff] }
 0x112   :  { %4364 = vmatpush3.bf16.msra.mxu1 %v4361_v61  ;;  %3661 = vmatprep.mubr.msk.f32.mxu1 %vm265_vm0, %v2921_v1  ;;  %v4333_v61 = vpack.c.bf16 %v3022_v58, %v3021_v57  ;;  %v2991_v1 = vld [vmem:[%s5890_s2 + $0x150] sm:$0xff]  ;;  %v3088_v58 = vld [vmem:[%s5890_s2 + $0x258] sm:$0xff] }
 0x113   :  { %3700 = vmatmul.mubr.msk.f32.gmra.mrb[12].mxu0 %vm265_vm0, %v139_v29  ;;  %4366 = vmatprep.subr.bf16.mxu1 %v4365_v2  ;;  %v2932_v29 = vld [vmem:[%s5890_s2 + $0xf8] sm:$0xff]  ;;  %v3087_v57 = vld [vmem:[%s5890_s2 + $0x250] sm:$0xff] }
 0x114   :  { %4296 = vmatpush3.bf16.msra.mxu0 %v4293_v26  ;;  %3702 = vmatprep.mubr.msk.f32.mxu0 %vm265_vm0, %v140_v30  ;;  %v3076_v26 = vld [vmem:[%s5888_s1 + $0x278] sm:$0xff] }
 0x115   :  { %4298 = vmatprep.subr.bf16.mxu0 %v4297_v33  ;;  %3662 = vmatmul.mubr.msk.f32.gmra.mrb[8].mxu1 %vm265_vm0, %v2922_v3  ;;  %v4385_v28 = vpack.c.bf16 %v3076_v26, %v3075_v25  ;;  %v3025_v3 = vld [vmem:[%s5888_s1 + $0x1e0] sm:$0xff] }
 0x116   :  { %4368 = vmatpush3.bf16.msra.mxu1 %v4365_v2  ;;  %3664 = vmatprep.mubr.msk.f32.mxu1 %vm265_vm0, %v2923_v6  ;;  %v4337_v2 = vpack.c.bf16 %v3024_v63, %v3023_v62  ;;  %v2993_v6 = vld [vmem:[%s5890_s2 + $0x160] sm:$0xff]  ;;  %v3090_v63 = vld [vmem:[%s5890_s2 + $0x268] sm:$0xff] }
 0x117   :  { %3703 = vmatmul.mubr.msk.f32.gmra.mrb[14].mxu0 %vm265_vm0, %v141_v37  ;;  %4370 = vmatprep.subr.bf16.mxu1 %v4369_v7  ;;  %v3014_v37 = vld [vmem:[%s5888_s1 + $0x188] sm:$0xff]  ;;  %v3089_v62 = vld [vmem:[%s5890_s2 + $0x260] sm:$0xff] }
 0x118   :  { %4300 = vmatpush3.bf16.msra.mxu0 %v4297_v33  ;;  %3705 = vmatprep.mubr.msk.f32.mxu0 %vm265_vm0, %v142_v38  ;;  %v4317_v41 = vpack.c.bf16 %v3014_v37, %v3013_v36 }
 0x119   :  { %4302 = vmatprep.subr.bf16.mxu0 %v4301_v39  ;;  %3665 = vmatmul.mubr.msk.f32.gmra.mrb[10].mxu1 %vm265_vm0, %v2924_v8  ;;  %v3027_v8 = vld [vmem:[%s5888_s1 + $0x1f0] sm:$0xff] }
 0x11a   :  { %4372 = vmatpush3.bf16.msra.mxu1 %v4369_v7  ;;  %3667 = vmatprep.mubr.msk.f32.mxu1 %vm265_vm0, %v2925_v11  ;;  %v4341_v7 = vpack.c.bf16 %v3026_v4, %v3025_v3  ;;  %v2995_v11 = vld [vmem:[%s5890_s2 + $0x170] sm:$0xff]  ;;  %v3092_v4 = vld [vmem:[%s5890_s2 + $0x278] sm:$0xff] }
 0x11b   :  { %3706 = vmatmul.mubr.msk.f32.gmra.mrb[16].mxu0 %vm265_vm0, %v143_v42  ;;  %4374 = vmatprep.subr.bf16.mxu1 %v4373_v12  ;;  %v3015_v42 = vld [vmem:[%s5888_s1 + $0x190] sm:$0xff] }
 0x11c   :  { %4304 = vmatpush3.bf16.msra.mxu0 %v4301_v39  ;;  %3708 = vmatprep.mubr.msk.f32.mxu0 %vm265_vm0, %v144_v43  ;;  %v3016_v43 = vld [vmem:[%s5888_s1 + $0x198] sm:$0xff]  ;;  %v3091_v3 = vld [vmem:[%s5890_s2 + $0x270] sm:$0xff] }
 0x11d   :  { %4306 = vmatprep.subr.bf16.mxu0 %v4305_v44  ;;  %3668 = vmatmul.mubr.msk.f32.gmra.mrb[12].mxu1 %vm265_vm0, %v2926_v14  ;;  %v4321_v46 = vpack.c.bf16 %v3016_v43, %v3015_v42  ;;  %v2996_v14 = vld [vmem:[%s5890_s2 + $0x178] sm:$0xff]  ;;  %v3078_v42 = vld [vmem:[%s5890_s2 + $0x208] sm:$0xff]  ;;  %v3079_v43 = vld [vmem:[%s5890_s2 + $0x210] sm:$0xff] }
 0x11e   :  { %4376 = vmatpush3.bf16.msra.mxu1 %v4373_v12  ;;  %3670 = vmatprep.mubr.msk.f32.mxu1 %vm265_vm0, %v2927_v17  ;;  %v4345_v12 = vpack.c.bf16 %v3028_v9, %v3027_v8  ;;  %v3167_v8 = vld [vmem:[%s5888_s1 + $0x350] sm:$0xff]  ;;  %v3168_v9 = vld [vmem:[%s5888_s1 + $0x358] sm:$0xff] }
 0x11f   :  { %3709 = vmatmul.mubr.msk.f32.gmra.mrb[18].mxu0 %vm265_vm0, %v145_v45  ;;  %4378 = vmatprep.subr.bf16.mxu1 %v4377_v18  ;;  %v2983_v45 = vld [vmem:[%s5890_s2 + $0x110] sm:$0xff] }
 0x120   :  { %4308 = vmatpush3.bf16.msra.mxu0 %v4305_v44  ;;  %3743 = vmatprep.mubr.f32.mxu0 %v4706_v13  ;;  %v2982_v44 = vld [vmem:[%s5890_s2 + $0x108] sm:$0xff] }
 0x121   :  { %3671 = vmatmul.mubr.msk.f32.gmra.mrb[14].mxu1 %vm265_vm0, %v2928_v19 }
 0x122   :  { %4380 = vmatpush3.bf16.msra.mxu1 %v4377_v18  ;;  %3673 = vmatprep.mubr.msk.f32.mxu1 %vm265_vm0, %v2929_v22 }
 0x123   :  { %3744 = vmatmul.mubr.f32.vlgmr.msra.gmra.mrb[20].mxu0 %v4746_v31  ;;  %4382 = vmatprep.subr.bf16.mxu1 %v4381_v23 }
 0x124   :  { %3746 = vmatprep.mubr.f32.mxu0 %v4748_v32 }
 0x125   :  { %3674 = vmatmul.mubr.msk.f32.gmra.mrb[16].mxu1 %vm265_vm0, %v2930_v24 }
 0x126   :  { %4384 = vmatpush3.bf16.msra.mxu1 %v4381_v23  ;;  %3676 = vmatprep.mubr.msk.f32.mxu1 %vm265_vm0, %v2931_v27 }
 0x127   :  { %3747 = vmatmul.mubr.f32.gmra.mrb[22].mxu0 %v4757_v35  ;;  %4386 = vmatprep.subr.bf16.mxu1 %v4385_v28 }
 0x128   :  { %3757 = vmatprep.mubr.msk.f32.mxu0 %vm265_vm0, %v2981_v52  ;;  %v3019_v52 = vld [vmem:[%s5888_s1 + $0x1b0] sm:$0xff] }
 0x129   :  { %3677 = vmatmul.mubr.msk.f32.gmra.mrb[18].mxu1 %vm265_vm0, %v2932_v29  ;;  %v4329_v56 = vpack.c.bf16 %v3020_v53, %v3019_v52  ;;  %v3085_v52 = vld [vmem:[%s5890_s2 + $0x240] sm:$0xff]  ;;  %v3086_v53 = vld [vmem:[%s5890_s2 + $0x248] sm:$0xff] }
 0x12a   :  { %4388 = vmatpush3.bf16.msra.mxu1 %v4385_v28  ;;  %3883 = vmatprep.mubr.f32.mxu1 %v4706_v13 }
 0x12d   :  { %3884 = vmatmul.mubr.f32.vlgmr.msra.gmra.mrb[20].mxu1 %v4746_v31 }
 0x12e   :  { %3886 = vmatprep.mubr.f32.mxu1 %v4748_v32 }
 0x131   :  { %3887 = vmatmul.mubr.f32.gmra.mrb[22].mxu1 %v4757_v35 }
 0x1e0   :  { %v5160_v15 = vpop.f32.mrb[4].mxu1 }
 0x1e1   :  { %v5162_v16 = vpop.f32.mrb[5].mxu1 }
 0x1e4   :  { %v5164_v17 = vpop.f32.mrb[6].mxu1 }
 0x1e5   :  { %v5166_v18 = vpop.f32.mrb[7].mxu1 }
 0x1e8   :  { %v5168_v19 = vpop.f32.mrb[8].mxu1 }
 0x1e9   :  { %v5170_v20 = vpop.f32.mrb[9].mxu1 }
 0x1ec   :  { %v5172_v21 = vpop.f32.mrb[10].mxu1 }
 0x1ed   :  { %v5174_v22 = vpop.f32.mrb[11].mxu1 }
 0x1f0   :  { %v5176_v23 = vpop.f32.mrb[12].mxu1 }
 0x1f1   :  { %v5178_v24 = vpop.f32.mrb[13].mxu1 }
 0x1f4   :  { %v5180_v25 = vpop.f32.mrb[14].mxu1 }
 0x1f5   :  { %v5182_v26 = vpop.f32.mrb[15].mxu1 }
 0x1f6   :  { %v3745_v30 = vpop.f32.mrb[20].mxu0 }
 0x1f7   :  { %v735_v33 = vpop.f32.mrb[21].mxu0 }
 0x1f8   :  { %v4309_v34 = vpack.c.bf16 %v3745_v30, %v735_v33  ;;  %v5184_v27 = vpop.f32.mrb[16].mxu1 }
 0x1f9   :  { %v5186_v28 = vpop.f32.mrb[17].mxu1 }
 0x1fa   :  { %v3748_v38 = vpop.f32.mrb[22].mxu0  ;;  %4310 = vmatprep.subr.bf16.mxu0 %v4309_v34 }
 0x1fb   :  { %v745_v39 = vpop.f32.mrb[23].mxu0  ;;  %4312 = vmatpush3.bf16.msra.mxu0 %v4309_v34 }
 0x1fc   :  { %v4313_v40 = vpack.c.bf16 %v3748_v38, %v745_v39  ;;  %v5188_v29 = vpop.f32.mrb[18].mxu1 }
 0x1fd   :  { %v5190_v30 = vpop.f32.mrb[19].mxu1 }
 0x1fe   :  { %4314 = vmatprep.subr.bf16.mxu0 %v4313_v40 }
 0x1ff   :  { %4316 = vmatpush3.bf16.msra.mxu0 %v4313_v40  ;;  %v3029_v40 = vld [vmem:[%s5890_s2 + $0x180] sm:$0xff] }
 0x200   :  { %4318 = vmatprep.subr.bf16.mxu0 %v4317_v41  ;;  %v3885_v33 = vpop.f32.mrb[20].mxu1 }
 0x201   :  { %v1391_v34 = vpop.f32.mrb[21].mxu1 }
 0x202   :  { %3758 = vmatmul.mubr.msk.f32.vlgmr.msra.gmra.mrb[4].mxu0 %vm265_vm0, %v2982_v44  ;;  %v4389_v36 = vpack.c.bf16 %v3885_v33, %v1391_v34  ;;  %v3080_v44 = vld [vmem:[%s5890_s2 + $0x218] sm:$0xff] }
 0x203   :  { %4320 = vmatpush3.bf16.msra.mxu0 %v4317_v41  ;;  %3760 = vmatprep.mubr.msk.f32.mxu0 %vm265_vm0, %v2983_v45  ;;  %v3077_v41 = vld [vmem:[%s5890_s2 + $0x200] sm:$0xff]  ;;  %v3172_v34 = vld [vmem:[%s5888_s1 + $0x378] sm:$0xff] }
 0x204   :  { %4322 = vmatprep.subr.bf16.mxu0 %v4321_v46  ;;  %v3888_v37 = vpop.f32.mrb[22].mxu1  ;;  %4390 = vmatprep.subr.bf16.mxu1 %v4389_v36  ;;  %v3081_v45 = vld [vmem:[%s5890_s2 + $0x220] sm:$0xff] }
 0x205   :  { %v1401_v38 = vpop.f32.mrb[23].mxu1  ;;  %4392 = vmatpush3.bf16.msra.mxu1 %v4389_v36  ;;  %3897 = vmatprep.mubr.msk.f32.mxu1 %vm265_vm0, %v3077_v41  ;;  %v3110_v41 = vld [vmem:[%s5888_s1 + $0x288] sm:$0xff] }
 0x206   :  { %3761 = vmatmul.mubr.msk.f32.gmra.mrb[6].mxu0 %vm265_vm0, %v2984_v49  ;;  %v4393_v39 = vpack.c.bf16 %v3888_v37, %v1401_v38  ;;  %v3157_v49 = vld [vmem:[%s5888_s1 + $0x300] sm:$0xff] }
 0x207   :  { %4324 = vmatpush3.bf16.msra.mxu0 %v4321_v46  ;;  %3763 = vmatprep.mubr.msk.f32.mxu0 %vm265_vm0, %v2985_v50  ;;  %v3082_v46 = vld [vmem:[%s5890_s2 + $0x228] sm:$0xff] }
 0x208   :  { %4326 = vmatprep.subr.bf16.mxu0 %v4325_v51  ;;  %4394 = vmatprep.subr.bf16.mxu1 %v4393_v39  ;;  %v3158_v50 = vld [vmem:[%s5888_s1 + $0x308] sm:$0xff] }
 0x209   :  { %4396 = vmatpush3.bf16.msra.mxu1 %v4393_v39 }
 0x20a   :  { %3764 = vmatmul.mubr.msk.f32.gmra.mrb[8].mxu0 %vm265_vm0, %v2986_v54  ;;  %v3159_v54 = vld [vmem:[%s5888_s1 + $0x310] sm:$0xff] }
 0x20b   :  { %4328 = vmatpush3.bf16.msra.mxu0 %v4325_v51  ;;  %3766 = vmatprep.mubr.msk.f32.mxu0 %vm265_vm0, %v2987_v55  ;;  %v4437_v51 = vpack.c.bf16 %v3158_v50, %v3157_v49  ;;  %v3160_v55 = vld [vmem:[%s5888_s1 + $0x318] sm:$0xff]  ;;  %v3031_v49 = vld [vmem:[%s5890_s2 + $0x190] sm:$0xff] }
 0x20c   :  { %4330 = vmatprep.subr.bf16.mxu0 %v4329_v56  ;;  %3898 = vmatmul.mubr.msk.f32.vlgmr.msra.gmra.mrb[24].mxu1 %vm265_vm0, %v3078_v42 }
 0x20d   :  { %3900 = vmatprep.mubr.msk.f32.mxu1 %vm265_vm0, %v3079_v43  ;;  %4438 = vmatprep.subr.bf16.mxu1 %v4437_v51 }
 0x20e   :  { %3767 = vmatmul.mubr.msk.f32.gmra.mrb[10].mxu0 %vm265_vm0, %v2988_v59  ;;  %4440 = vmatpush3.bf16.msra.mxu1 %v4437_v51  ;;  %v3161_v59 = vld [vmem:[%s5888_s1 + $0x320] sm:$0xff] }
 0x20f   :  { %4332 = vmatpush3.bf16.msra.mxu0 %v4329_v56  ;;  %3769 = vmatprep.mubr.msk.f32.mxu0 %vm265_vm0, %v2989_v60  ;;  %v4441_v56 = vpack.c.bf16 %v3160_v55, %v3159_v54  ;;  %v3162_v60 = vld [vmem:[%s5888_s1 + $0x328] sm:$0xff]  ;;  %v3113_v51 = vld [vmem:[%s5888_s1 + $0x2a0] sm:$0xff] }
 0x210   :  { %4334 = vmatprep.subr.bf16.mxu0 %v4333_v61  ;;  %3901 = vmatmul.mubr.msk.f32.gmra.mrb[26].mxu1 %vm265_vm0, %v3080_v44  ;;  %v3033_v54 = vld [vmem:[%s5890_s2 + $0x1a0] sm:$0xff] }
 0x211   :  { %3903 = vmatprep.mubr.msk.f32.mxu1 %vm265_vm0, %v3081_v45  ;;  %4442 = vmatprep.subr.bf16.mxu1 %v4441_v56 }
 0x212   :  { %3770 = vmatmul.mubr.msk.f32.gmra.mrb[12].mxu0 %vm265_vm0, %v2990_v0  ;;  %4444 = vmatpush3.bf16.msra.mxu1 %v4441_v56  ;;  %v3163_v0 = vld [vmem:[%s5888_s1 + $0x330] sm:$0xff] }
 0x213   :  { %4336 = vmatpush3.bf16.msra.mxu0 %v4333_v61  ;;  %3772 = vmatprep.mubr.msk.f32.mxu0 %vm265_vm0, %v2991_v1  ;;  %v4445_v61 = vpack.c.bf16 %v3162_v60, %v3161_v59  ;;  %v3164_v1 = vld [vmem:[%s5888_s1 + $0x338] sm:$0xff]  ;;  %v3115_v56 = vld [vmem:[%s5888_s1 + $0x2b0] sm:$0xff] }
 0x214   :  { %4338 = vmatprep.subr.bf16.mxu0 %v4337_v2  ;;  %3904 = vmatmul.mubr.msk.f32.gmra.mrb[28].mxu1 %vm265_vm0, %v3082_v46  ;;  %v3111_v46 = vld [vmem:[%s5888_s1 + $0x290] sm:$0xff] }
 0x215   :  { %3906 = vmatprep.mubr.msk.f32.mxu1 %vm265_vm0, %v3083_v47  ;;  %4446 = vmatprep.subr.bf16.mxu1 %v4445_v61  ;;  %v3112_v47 = vld [vmem:[%s5888_s1 + $0x298] sm:$0xff]  ;;  %v3035_v59 = vld [vmem:[%s5890_s2 + $0x1b0] sm:$0xff] }
 0x216   :  { %3773 = vmatmul.mubr.msk.f32.gmra.mrb[14].mxu0 %vm265_vm0, %v2992_v5  ;;  %4448 = vmatpush3.bf16.msra.mxu1 %v4445_v61  ;;  %v3165_v5 = vld [vmem:[%s5888_s1 + $0x340] sm:$0xff]  ;;  %v4401_v50 = vpack.c.bf16 %v3112_v47, %v3111_v46 }
 0x217   :  { %4340 = vmatpush3.bf16.msra.mxu0 %v4337_v2  ;;  %3775 = vmatprep.mubr.msk.f32.mxu0 %vm265_vm0, %v2993_v6  ;;  %v4449_v2 = vpack.c.bf16 %v3164_v1, %v3163_v0  ;;  %v3166_v6 = vld [vmem:[%s5888_s1 + $0x348] sm:$0xff]  ;;  %v3117_v61 = vld [vmem:[%s5888_s1 + $0x2c0] sm:$0xff] }
 0x218   :  { %4342 = vmatprep.subr.bf16.mxu0 %v4341_v7  ;;  %3907 = vmatmul.mubr.msk.f32.gmra.mrb[30].mxu1 %vm265_vm0, %v3084_v48  ;;  %v3030_v48 = vld [vmem:[%s5890_s2 + $0x188] sm:$0xff]  ;;  %v3037_v0 = vld [vmem:[%s5890_s2 + $0x1c0] sm:$0xff] }
 0x219   :  { %3909 = vmatprep.mubr.msk.f32.mxu1 %vm265_vm0, %v3085_v52  ;;  %4450 = vmatprep.subr.bf16.mxu1 %v4449_v2  ;;  %v3114_v52 = vld [vmem:[%s5888_s1 + $0x2a8] sm:$0xff] }
 0x21a   :  { %3776 = vmatmul.mubr.msk.f32.gmra.mrb[16].mxu0 %vm265_vm0, %v2994_v10  ;;  %4452 = vmatpush3.bf16.msra.mxu1 %v4449_v2  ;;  %v4457_v10 = vpack.c.bf16 %v3168_v9, %v3167_v8  ;;  %v4405_v55 = vpack.c.bf16 %v3114_v52, %v3113_v51  ;;  %v3119_v2 = vld [vmem:[%s5888_s1 + $0x2d0] sm:$0xff]  ;;  %v3122_v8 = vld [vmem:[%s5888_s1 + $0x2e8] sm:$0xff]  ;;  %v3040_v9 = vld [vmem:[%s5890_s2 + $0x1d8] sm:$0xff] }
 0x21b   :  { %4344 = vmatpush3.bf16.msra.mxu0 %v4341_v7  ;;  %3778 = vmatprep.mubr.msk.f32.mxu0 %vm265_vm0, %v2995_v11  ;;  %v4453_v7 = vpack.c.bf16 %v3166_v6, %v3165_v5  ;;  %v3169_v11 = vld [vmem:[%s5888_s1 + $0x360] sm:$0xff]  ;;  %v3039_v5 = vld [vmem:[%s5890_s2 + $0x1d0] sm:$0xff] }
 0x21c   :  { %4346 = vmatprep.subr.bf16.mxu0 %v4345_v12  ;;  %3910 = vmatmul.mubr.msk.f32.gmra.mrb[32].mxu1 %vm265_vm0, %v3086_v53  ;;  %v3032_v53 = vld [vmem:[%s5890_s2 + $0x198] sm:$0xff] }
 0x21d   :  { %3912 = vmatprep.mubr.msk.f32.mxu1 %vm265_vm0, %v3087_v57  ;;  %4454 = vmatprep.subr.bf16.mxu1 %v4453_v7  ;;  %v3116_v57 = vld [vmem:[%s5888_s1 + $0x2b8] sm:$0xff] }
 0x21e   :  { %3779 = vmatmul.mubr.msk.f32.gmra.mrb[18].mxu0 %vm265_vm0, %v2996_v14  ;;  %4456 = vmatpush3.bf16.msra.mxu1 %v4453_v7  ;;  %v3171_v14 = vld [vmem:[%s5888_s1 + $0x370] sm:$0xff]  ;;  %v4409_v60 = vpack.c.bf16 %v3116_v57, %v3115_v56  ;;  %v3121_v7 = vld [vmem:[%s5888_s1 + $0x2e0] sm:$0xff] }
 0x21f   :  { %4348 = vmatpush3.bf16.msra.mxu0 %v4345_v12  ;;  %3813 = vmatprep.mubr.f32.mxu0 %v4706_v13  ;;  %v3170_v12 = vld [vmem:[%s5888_s1 + $0x368] sm:$0xff]  ;;  %v4465_v36 = vpack.c.bf16 %v3172_v34, %v3171_v14  ;;  %v3124_v14 = vld [vmem:[%s5888_s1 + $0x2f8] sm:$0xff]  ;;  %v3043_v34 = vld [vmem:[%s5890_s2 + $0x1f0] sm:$0xff] }
 0x220   :  { %3913 = vmatmul.mubr.msk.f32.gmra.mrb[34].mxu1 %vm265_vm0, %v3088_v58  ;;  %4458 = vmatprep.subr.bf16.mxu1 %v4457_v10  ;;  %v4461_v33 = vpack.c.bf16 %v3170_v12, %v3169_v11  ;;  %v3034_v58 = vld [vmem:[%s5890_s2 + $0x1a8] sm:$0xff]  ;;  %v4421_v11 = vpack.c.bf16 %v3122_v8, %v3121_v7  ;;  %v3123_v12 = vld [vmem:[%s5888_s1 + $0x2f0] sm:$0xff]  ;;  %v2302_v7 = vld [vmem:[%s5891_s3 + $0x160] sm:$0xff] }
 0x221   :  { %3915 = vmatprep.mubr.msk.f32.mxu1 %vm265_vm0, %v3089_v62  ;;  %v3118_v62 = vld [vmem:[%s5888_s1 + $0x2c8] sm:$0xff]  ;;  %v3187_v57 = vld [vmem:[%s5890_s2 + $0x370] sm:$0xff]  ;;  %v2305_v8 = vld [vmem:[%s5891_s3 + $0x178] sm:$0xff] }
 0x222   :  { %3814 = vmatmul.mubr.f32.vlgmr.msra.gmra.mrb[24].mxu0 %v4746_v31  ;;  %4460 = vmatpush3.bf16.msra.mxu1 %v4457_v10  ;;  %v4413_v1 = vpack.c.bf16 %v3118_v62, %v3117_v61  ;;  %v3041_v10 = vld [vmem:[%s5890_s2 + $0x1e0] sm:$0xff]  ;;  %v2292_v61 = vld [vmem:[%s5891_s3 + $0x110] sm:$0xff]  ;;  %v2295_v62 = vld [vmem:[%s5891_s3 + $0x128] sm:$0xff] }
 0x223   :  { %3816 = vmatprep.mubr.f32.mxu0 %v4748_v32  ;;  %4462 = vmatprep.subr.bf16.mxu1 %v4461_v33 }
 0x224   :  { %3916 = vmatmul.mubr.msk.f32.gmra.mrb[36].mxu1 %vm265_vm0, %v3090_v63  ;;  %v3036_v63 = vld [vmem:[%s5890_s2 + $0x1b8] sm:$0xff] }
 0x225   :  { %3918 = vmatprep.mubr.msk.f32.mxu1 %vm265_vm0, %v3091_v3  ;;  %v3120_v3 = vld [vmem:[%s5888_s1 + $0x2d8] sm:$0xff] }
 0x226   :  { %3817 = vmatmul.mubr.f32.gmra.mrb[26].mxu0 %v4757_v35  ;;  %4464 = vmatpush3.bf16.msra.mxu1 %v4461_v33  ;;  %v4417_v6 = vpack.c.bf16 %v3120_v3, %v3119_v2  ;;  %v3042_v33 = vld [vmem:[%s5890_s2 + $0x1e8] sm:$0xff]  ;;  %v2298_v3 = vld [vmem:[%s5891_s3 + $0x140] sm:$0xff] }
 0x227   :  { %3827 = vmatprep.mubr.msk.f32.mxu0 %vm265_vm0, %v3029_v40  ;;  %4466 = vmatprep.subr.bf16.mxu1 %v4465_v36  ;;  %v3109_v40 = vld [vmem:[%s5888_s1 + $0x280] sm:$0xff]  ;;  %v2299_v2 = vld [vmem:[%s5891_s3 + $0x148] sm:$0xff] }
 0x228   :  { %3919 = vmatmul.mubr.msk.f32.gmra.mrb[38].mxu1 %vm265_vm0, %v3092_v4  ;;  %v4397_v45 = vpack.c.bf16 %v3110_v41, %v3109_v40  ;;  %v3038_v4 = vld [vmem:[%s5890_s2 + $0x1c8] sm:$0xff] }
 0x229   :  { %4023 = vmatprep.mubr.f32.mxu1 %v4706_v13 }
 0x22a   :  { %4468 = vmatpush3.bf16.msra.mxu1 %v4465_v36  ;;  %v4425_v36 = vpack.c.bf16 %v3124_v14, %v3123_v12 }
 0x22d   :  { %4024 = vmatmul.mubr.f32.vlgmr.msra.gmra.mrb[40].mxu1 %v4746_v31 }
 0x22e   :  { %4026 = vmatprep.mubr.f32.mxu1 %v4748_v32 }
 0x231   :  { %4027 = vmatmul.mubr.f32.gmra.mrb[42].mxu1 %v4757_v35 }
 0x232   :  { %4058 = vmatprep.mubr.msk.f32.mxu1 %vm265_vm0, %v3187_v57 }
 0x2f5   :  { %v3815_v37 = vpop.f32.mrb[24].mxu0 }
 0x2f6   :  { %v1063_v38 = vpop.f32.mrb[25].mxu0 }
 0x2f7   :  { %v4349_v39 = vpack.c.bf16 %v3815_v37, %v1063_v38  ;;  %v3044_v37 = vld [vmem:[%s5890_s2 + $0x1f8] sm:$0xff]  ;;  %v5424_v38 = vpop.f32.mrb[24].mxu1 }
 0x2f9   :  { %v3818_v42 = vpop.f32.mrb[26].mxu0  ;;  %4350 = vmatprep.subr.bf16.mxu0 %v4349_v39 }
 0x2fa   :  { %v1073_v43 = vpop.f32.mrb[27].mxu0  ;;  %4352 = vmatpush3.bf16.msra.mxu0 %v4349_v39  ;;  %v5426_v39 = vpop.f32.mrb[25].mxu1 }
 0x2fb   :  { %v4353_v44 = vpack.c.bf16 %v3818_v42, %v1073_v43  ;;  %v5428_v40 = vpop.f32.mrb[26].mxu1 }
 0x2fc   :  { %v5430_v41 = vpop.f32.mrb[27].mxu1 }
 0x2fd   :  { %4354 = vmatprep.subr.bf16.mxu0 %v4353_v44  ;;  %v5432_v42 = vpop.f32.mrb[28].mxu1 }
 0x2fe   :  { %4356 = vmatpush3.bf16.msra.mxu0 %v4353_v44  ;;  %v5434_v43 = vpop.f32.mrb[29].mxu1 }
 0x2ff   :  { %4398 = vmatprep.subr.bf16.mxu0 %v4397_v45  ;;  %v5436_v44 = vpop.f32.mrb[30].mxu1 }
 0x301   :  { %3828 = vmatmul.mubr.msk.f32.vlgmr.msra.gmra.mrb[4].mxu0 %vm265_vm0, %v3030_v48 }
 0x302   :  { %4400 = vmatpush3.bf16.msra.mxu0 %v4397_v45  ;;  %3830 = vmatprep.mubr.msk.f32.mxu0 %vm265_vm0, %v3031_v49 }
 0x303   :  { %4402 = vmatprep.subr.bf16.mxu0 %v4401_v50 }
 0x305   :  { %3831 = vmatmul.mubr.msk.f32.gmra.mrb[6].mxu0 %vm265_vm0, %v3032_v53 }
 0x306   :  { %4404 = vmatpush3.bf16.msra.mxu0 %v4401_v50  ;;  %3833 = vmatprep.mubr.msk.f32.mxu0 %vm265_vm0, %v3033_v54  ;;  %v3125_v50 = vld [vmem:[%s5890_s2 + $0x280] sm:$0xff] }
 0x307   :  { %4406 = vmatprep.subr.bf16.mxu0 %v4405_v55 }
 0x309   :  { %3834 = vmatmul.mubr.msk.f32.gmra.mrb[8].mxu0 %vm265_vm0, %v3034_v58  ;;  %v3188_v58 = vld [vmem:[%s5890_s2 + $0x378] sm:$0xff] }
 0x30a   :  { %4408 = vmatpush3.bf16.msra.mxu0 %v4405_v55  ;;  %3836 = vmatprep.mubr.msk.f32.mxu0 %vm265_vm0, %v3035_v59  ;;  %v4646_v59 = vmov 0  }
 0x30b   :  { %4410 = vmatprep.subr.bf16.mxu0 %v4409_v60  ;;  %4645 = vset.pattern.permute.xlu1 %v4646_v59 }
 0x30c   :  { %4644 = vset.pattern.permute.xlu0 %v4646_v59 }
 0x30d   :  { %3837 = vmatmul.mubr.msk.f32.gmra.mrb[10].mxu0 %vm265_vm0, %v3036_v63  ;;  %2310 = vperm.xlu0 %4644, %v2292_v61   ;;  %v2293_v63 = vld [vmem:[%s5891_s3 + $0x118] sm:$0xff] }
 0x30e   :  { %4412 = vmatpush3.bf16.msra.mxu0 %v4409_v60  ;;  %3839 = vmatprep.mubr.msk.f32.mxu0 %vm265_vm0, %v3037_v0  ;;  %v2294_v60 = vld [vmem:[%s5891_s3 + $0x120] sm:$0xff]  ;;  %v2297_v0 = vld [vmem:[%s5891_s3 + $0x138] sm:$0xff] }
 0x30f   :  { %4414 = vmatprep.subr.bf16.mxu0 %v4413_v1  ;;  %2320 = vperm.xlu1 %4645, %v2294_v60  }
 0x311   :  { %3840 = vmatmul.mubr.msk.f32.gmra.mrb[12].mxu0 %vm265_vm0, %v3038_v4  ;;  %2315 = vperm.xlu0 %4644, %v2293_v63   ;;  %v2301_v4 = vld [vmem:[%s5891_s3 + $0x158] sm:$0xff] }
 0x312   :  { %4416 = vmatpush3.bf16.msra.mxu0 %v4413_v1  ;;  %3842 = vmatprep.mubr.msk.f32.mxu0 %vm265_vm0, %v3039_v5  ;;  %v2296_v1 = vld [vmem:[%s5891_s3 + $0x130] sm:$0xff] }
 0x313   :  { %4418 = vmatprep.subr.bf16.mxu0 %v4417_v6  ;;  %2325 = vperm.xlu1 %4645, %v2295_v62   ;;  %v2300_v5 = vld [vmem:[%s5891_s3 + $0x150] sm:$0xff] }
 0x315   :  { %3843 = vmatmul.mubr.msk.f32.gmra.mrb[14].mxu0 %vm265_vm0, %v3040_v9  ;;  %2330 = vperm.xlu0 %4644, %v2296_v1   ;;  %v2304_v9 = vld [vmem:[%s5891_s3 + $0x170] sm:$0xff] }
 0x316   :  { %4420 = vmatpush3.bf16.msra.mxu0 %v4417_v6  ;;  %3845 = vmatprep.mubr.msk.f32.mxu0 %vm265_vm0, %v3041_v10  ;;  %v2303_v6 = vld [vmem:[%s5891_s3 + $0x168] sm:$0xff] }
 0x317   :  { %4422 = vmatprep.subr.bf16.mxu0 %v4421_v11  ;;  %2335 = vperm.xlu1 %4645, %v2297_v0   ;;  %v2307_v10 = vld [vmem:[%s5891_s3 + $0x188] sm:$0xff] }
 0x319   :  { %3846 = vmatmul.mubr.msk.f32.gmra.mrb[16].mxu0 %vm265_vm0, %v3042_v33  ;;  %2340 = vperm.xlu0 %4644, %v2298_v3  }
 0x31a   :  { %4424 = vmatpush3.bf16.msra.mxu0 %v4421_v11  ;;  %3848 = vmatprep.mubr.msk.f32.mxu0 %vm265_vm0, %v3043_v34  ;;  %v2306_v11 = vld [vmem:[%s5891_s3 + $0x180] sm:$0xff] }
 0x31b   :  { %4426 = vmatprep.subr.bf16.mxu0 %v4425_v36  ;;  %2345 = vperm.xlu1 %4645, %v2299_v2  }
 0x31d   :  { %3849 = vmatmul.mubr.msk.f32.gmra.mrb[18].mxu0 %vm265_vm0, %v3044_v37  ;;  %2350 = vperm.xlu0 %4644, %v2300_v5  }
 0x31e   :  { %4428 = vmatpush3.bf16.msra.mxu0 %v4425_v36  ;;  %3953 = vmatprep.mubr.f32.mxu0 %v4706_v13  ;;  %v5438_v13 = vpop.f32.mrb[31].mxu1 }
 0x31f   :  { %2355 = vperm.xlu1 %4645, %v2301_v4  }
 0x321   :  { %3954 = vmatmul.mubr.f32.vlgmr.msra.gmra.mrb[28].mxu0 %v4746_v31  ;;  %v5440_v31 = vpop.f32.mrb[32].mxu1  ;;  %2360 = vperm.xlu0 %4644, %v2302_v7  }
 0x322   :  { %3956 = vmatprep.mubr.f32.mxu0 %v4748_v32  ;;  %v5442_v32 = vpop.f32.mrb[33].mxu1 }
 0x323   :  { %2365 = vperm.xlu1 %4645, %v2303_v6  }
 0x325   :  { %3957 = vmatmul.mubr.f32.gmra.mrb[30].mxu0 %v4757_v35  ;;  %v5444_v35 = vpop.f32.mrb[34].mxu1  ;;  %2370 = vperm.xlu0 %4644, %v2304_v9   ;;  %v3132_v9 = vld [vmem:[%s5890_s2 + $0x2b8] sm:$0xff] }
 0x326   :  { %v5446_v45 = vpop.f32.mrb[35].mxu1  ;;  %3967 = vmatprep.mubr.msk.f32.mxu0 %vm265_vm0, %v3125_v50 }
 0x327   :  { %v5448_v46 = vpop.f32.mrb[36].mxu1  ;;  %2375 = vperm.xlu1 %4645, %v2305_v8   ;;  %v3130_v8 = vld [vmem:[%s5890_s2 + $0x2a8] sm:$0xff] }
 0x328   :  { %v5450_v47 = vpop.f32.mrb[37].mxu1 }
 0x329   :  { %v5452_v48 = vpop.f32.mrb[38].mxu1  ;;  %2380 = vperm.xlu0 %4644, %v2306_v11   ;;  %v3135_v11 = vld [vmem:[%s5890_s2 + $0x2d0] sm:$0xff] }
 0x32a   :  { %v5454_v49 = vpop.f32.mrb[39].mxu1 }
 0x32b   :  { %v4025_v51 = vpop.f32.mrb[40].mxu1  ;;  %2385 = vperm.xlu1 %4645, %v2307_v10   ;;  %v3133_v10 = vld [vmem:[%s5890_s2 + $0x2c0] sm:$0xff] }
 0x32c   :  { %v2047_v52 = vpop.f32.mrb[41].mxu1 }
 0x32d   :  { %v5460_v53 = vpack.c.bf16 %v4025_v51, %v2047_v52  ;;  %v4028_v54 = vpop.f32.mrb[42].mxu1 }
 0x32e   :  { %v2057_v55 = vpop.f32.mrb[43].mxu1 }
 0x32f   :  { %4539 = vmatprep.subr.bf16.mxu1 %v5460_v53  ;;  %v5464_v56 = vpack.c.bf16 %v4028_v54, %v2057_v55 }
 0x330   :  { %4541 = vmatpush3.bf16.msra.mxu1 %v5460_v53 }
 0x331   :  { %4540 = vmatprep.subr.bf16.mxu1 %v5464_v56 }
 0x334   :  { %4542 = vmatpush3.bf16.msra.mxu1 %v5464_v56 }
 0x337   :  { %4059 = vmatmul.mubr.msk.f32.vlgmr.msra.gmra.mrb[44].mxu1 %vm265_vm0, %v3188_v58 }
 0x3d4   :  { %v3829_v12 = vpop.f32.mrb[4].mxu0 }
 0x3d5   :  { %v4543_v14 = vadd.f32 %v3829_v12, %v5160_v15  ;;  %v1213_v33 = vpop.f32.mrb[5].mxu0  ;;  %v3136_v12 = vld [vmem:[%s5890_s2 + $0x2d8] sm:$0xff] }
 0x3d6   :  { %v4546_v34 = vadd.f32 %v1213_v33, %v5162_v16  ;;  %v3138_v33 = vld [vmem:[%s5890_s2 + $0x2e8] sm:$0xff] }
 0x3d7   :  { %v5527_v36 = vadd.f32 %v4543_v14, %v5424_v38  ;;  %v3137_v14 = vld [vmem:[%s5890_s2 + $0x2e0] sm:$0xff] }
 0x3d8   :  { %v5530_v37 = vadd.f32 %v4546_v34, %v5426_v39  ;;  %v3832_v50 = vpop.f32.mrb[6].mxu0  ;;  %v3139_v34 = vld [vmem:[%s5890_s2 + $0x2f0] sm:$0xff] }
 0x3d9   :  { %v4549_v51 = vadd.f32 %v3832_v50, %v5164_v17  ;;  %v1223_v52 = vpop.f32.mrb[7].mxu0  ;;  %v3140_v50 = vld [vmem:[%s5890_s2 + $0x2f8] sm:$0xff] }
 0x3da   :  { %v4552_v54 = vadd.f32 %v1223_v52, %v5166_v18  ;;  %v3174_v52 = vld [vmem:[%s5890_s2 + $0x308] sm:$0xff] }
 0x3db   :  { %v5535_v55 = vadd.f32 %v4549_v51, %v5428_v40  ;;  %v3173_v51 = vld [vmem:[%s5890_s2 + $0x300] sm:$0xff] }
 0x3dc   :  { %v5538_v15 = vadd.f32 %v4552_v54, %v5430_v41  ;;  %v3835_v16 = vpop.f32.mrb[8].mxu0  ;;  %v3175_v54 = vld [vmem:[%s5890_s2 + $0x310] sm:$0xff] }
 0x3dd   :  { %v4555_v57 = vadd.f32 %v3835_v16, %v5168_v19  ;;  %v1233_v38 = vpop.f32.mrb[9].mxu0  ;;  %v3176_v16 = vld [vmem:[%s5890_s2 + $0x318] sm:$0xff] }
 0x3de   :  { %v4558_v58 = vadd.f32 %v1233_v38, %v5170_v20  ;;  %v3178_v38 = vld [vmem:[%s5890_s2 + $0x328] sm:$0xff] }
 0x3df   :  { %v5543_v39 = vadd.f32 %v4555_v57, %v5432_v42  ;;  %v3177_v57 = vld [vmem:[%s5890_s2 + $0x320] sm:$0xff] }
 0x3e0   :  { %v5546_v17 = vadd.f32 %v4558_v58, %v5434_v43  ;;  %v3838_v59 = vpop.f32.mrb[10].mxu0  ;;  %v3179_v58 = vld [vmem:[%s5890_s2 + $0x330] sm:$0xff] }
 0x3e1   :  { %v4561_v18 = vadd.f32 %v3838_v59, %v5172_v21  ;;  %v1243_v40 = vpop.f32.mrb[11].mxu0  ;;  %v3180_v59 = vld [vmem:[%s5890_s2 + $0x338] sm:$0xff] }
 0x3e2   :  { %v4564_v60 = vadd.f32 %v1243_v40, %v5174_v22  ;;  %v3182_v40 = vld [vmem:[%s5890_s2 + $0x348] sm:$0xff] }
 0x3e3   :  { %v5551_v41 = vadd.f32 %v4561_v18, %v5436_v44  ;;  %v3181_v18 = vld [vmem:[%s5890_s2 + $0x340] sm:$0xff] }
 0x3e4   :  { %v5554_v19 = vadd.f32 %v4564_v60, %v5438_v13  ;;  %v3841_v61 = vpop.f32.mrb[12].mxu0  ;;  %v3183_v60 = vld [vmem:[%s5890_s2 + $0x350] sm:$0xff] }
 0x3e5   :  { %v4567_v20 = vadd.f32 %v3841_v61, %v5176_v23  ;;  %v1253_v42 = vpop.f32.mrb[13].mxu0  ;;  %v3184_v61 = vld [vmem:[%s5890_s2 + $0x358] sm:$0xff] }
 0x3e6   :  { %v4570_v62 = vadd.f32 %v1253_v42, %v5178_v24  ;;  %v3186_v42 = vld [vmem:[%s5890_s2 + $0x368] sm:$0xff] }
 0x3e7   :  { %v5559_v43 = vadd.f32 %v4567_v20, %v5440_v31  ;;  %v3185_v20 = vld [vmem:[%s5890_s2 + $0x360] sm:$0xff] }
 0x3e8   :  { %v5562_v21 = vadd.f32 %v4570_v62, %v5442_v32  ;;  %v3844_v63 = vpop.f32.mrb[14].mxu0  ;;  %v2420_v62 = vld [vmem:[%s5891_s3 + $0xe0] sm:$0xff] }
 0x3e9   :  { %v4573_v22 = vadd.f32 %v3844_v63, %v5180_v25  ;;  %v1263_v44 = vpop.f32.mrb[15].mxu0  ;;  %v2421_v63 = vld [vmem:[%s5891_s3 + $0xe8] sm:$0xff] }
 0x3ea   :  { %v4576_v0 = vadd.f32 %v1263_v44, %v5182_v26 }
 0x3eb   :  { %v5567_v13 = vadd.f32 %v4573_v22, %v5444_v35  ;;  %v4477_v22 = vpack.c.bf16 %v2421_v63, %v2420_v62 }
 0x3ec   :  { %v5570_v23 = vadd.f32 %v4576_v0, %v5446_v45  ;;  %v3847_v1 = vpop.f32.mrb[16].mxu0  ;;  %v2422_v0 = vld [vmem:[%s5891_s3 + $0xf0] sm:$0xff] }
 0x3ed   :  { %v4579_v24 = vadd.f32 %v3847_v1, %v5184_v27  ;;  %v1273_v31 = vpop.f32.mrb[17].mxu0  ;;  %4478 = vmatprep.subr.bf16.mxu1 %v4477_v22  ;;  %v2423_v1 = vld [vmem:[%s5891_s3 + $0xf8] sm:$0xff] }
 0x3ee   :  { %v4582_v2 = vadd.f32 %v1273_v31, %v5186_v28  ;;  %4480 = vmatpush3.bf16.msra.mxu1 %v4477_v22  ;;  %v4481_v31 = vpack.c.bf16 %v2423_v1, %v2422_v0 }
 0x3ef   :  { %v5575_v32 = vadd.f32 %v4579_v24, %v5448_v46 }
 0x3f0   :  { %v5578_v25 = vadd.f32 %v4582_v2, %v5450_v47  ;;  %v3850_v3 = vpop.f32.mrb[18].mxu0  ;;  %4482 = vmatprep.subr.bf16.mxu1 %v4481_v31  ;;  %v2424_v2 = vld [vmem:[%s5891_s3 + $0x100] sm:$0xff] }
 0x3f1   :  { %v4585_v26 = vadd.f32 %v3850_v3, %v5188_v29  ;;  %v1283_v35 = vpop.f32.mrb[19].mxu0  ;;  %v3126_v29 = vld [vmem:[%s5890_s2 + $0x288] sm:$0xff] }
 0x3f2   :  { %v4589_v4 = vadd.f32 %v1283_v35, %v5190_v30  ;;  %v3127_v30 = vld [vmem:[%s5890_s2 + $0x290] sm:$0xff]  ;;  %4484 = vmatpush3.bf16.msra.mxu1 %v4481_v31  ;;  %v2425_v3 = vld [vmem:[%s5891_s3 + $0x108] sm:$0x3]  ;;  %v2311_v35 = vpop.permute.xlu0 %2310 }
 0x3f3   :  { %v5583_v45 = vadd.f32 %v4585_v26, %v5452_v48  ;;  %v3128_v48 = vld [vmem:[%s5890_s2 + $0x298] sm:$0xff]  ;;  %v4485_v26 = vpack.c.bf16 %v2425_v3, %v2424_v2 }
 0x3f4   :  { %v5586_v27 = vadd.f32 %v4589_v4, %v5454_v49  ;;  %v3955_v5 = vpop.f32.mrb[28].mxu0  ;;  %v3129_v49 = vld [vmem:[%s5890_s2 + $0x2a0] sm:$0xff]  ;;  %v2321_v4 = vpop.permute.xlu1 %2320 }
 0x3f5   :  { %v1719_v28 = vpop.f32.mrb[29].mxu0  ;;  %4487 = vmatprep.subr.msk.bf16.mxu1 %vm4486_vm3, %v4485_v26 }
 0x3f6   :  { %v4429_v6 = vpack.c.bf16 %v3955_v5, %v1719_v28  ;;  %4490 = vmatpush3.bf16.msk.msra.mxu1 %vm4486_vm3, %v4485_v26  ;;  %v2316_v5 = vpop.permute.xlu0 %2315 }
 0x3f8   :  { %v3958_v46 = vpop.f32.mrb[30].mxu0  ;;  %4430 = vmatprep.subr.bf16.mxu0 %v4429_v6  ;;  %v2326_v28 = vpop.permute.xlu1 %2325 }
 0x3f9   :  { %v1729_v7 = vpop.f32.mrb[31].mxu0  ;;  %4432 = vmatpush3.bf16.msra.mxu0 %v4429_v6 }
 0x3fa   :  { %v4433_v47 = vpack.c.bf16 %v3958_v46, %v1729_v7  ;;  %v2331_v6 = vpop.permute.xlu0 %2330 }
 0x3fc   :  { %4434 = vmatprep.subr.bf16.mxu0 %v4433_v47 }
 0x3fd   :  { %4436 = vmatpush3.bf16.msra.mxu0 %v4433_v47 }
 0x3fe   :  { %4470 = vmatprep.subr.bf16.mxu0 %v5460_v53 }
 0x400   :  { %3968 = vmatmul.mubr.msk.f32.vlgmr.msra.gmra.mrb[32].mxu0 %vm265_vm0, %v3126_v29  ;;  %v2336_v29 = vpop.permute.xlu1 %2335 }
 0x401   :  { %3970 = vmatprep.mubr.msk.f32.mxu0 %vm265_vm0, %v3127_v30  ;;  %4472 = vmatpush3.bf16.msra.mxu0 %v5460_v53  ;;  %v3131_v53 = vld [vmem:[%s5890_s2 + $0x2b0] sm:$0xff] }
 0x402   :  { %4474 = vmatprep.subr.bf16.mxu0 %v5464_v56 }
 0x404   :  { %3971 = vmatmul.mubr.msk.f32.gmra.mrb[34].mxu0 %vm265_vm0, %v3128_v48 }
 0x405   :  { %3973 = vmatprep.mubr.msk.f32.mxu0 %vm265_vm0, %v3129_v49  ;;  %4476 = vmatpush3.bf16.msra.mxu0 %v5464_v56  ;;  %v3134_v56 = vld [vmem:[%s5890_s2 + $0x2c8] sm:$0xff] }
 0x408   :  { %3974 = vmatmul.mubr.msk.f32.gmra.mrb[36].mxu0 %vm265_vm0, %v3130_v8 }
 0x409   :  { %3976 = vmatprep.mubr.msk.f32.mxu0 %vm265_vm0, %v3131_v53  ;;  %v2341_v53 = vpop.permute.xlu0 %2340 }
 0x40a   :  { %v4060_v44 = vpop.f32.mrb[44].mxu1 }
 0x40b   :  { %v2267_v24 = vpop.f32.mrb[45].mxu1 }
 0x40c   :  { %3977 = vmatmul.mubr.msk.f32.gmra.mrb[38].mxu0 %vm265_vm0, %v3132_v9 }
 0x40d   :  { %3979 = vmatprep.mubr.msk.f32.mxu0 %vm265_vm0, %v3133_v10 }
 0x410   :  { %3980 = vmatmul.mubr.msk.f32.gmra.mrb[40].mxu0 %vm265_vm0, %v3134_v56 }
 0x411   :  { %3982 = vmatprep.mubr.msk.f32.mxu0 %vm265_vm0, %v3135_v11 }
 0x414   :  { %3983 = vmatmul.mubr.msk.f32.gmra.mrb[42].mxu0 %vm265_vm0, %v3136_v12  ;;  %v2346_v12 = vpop.permute.xlu1 %2345 }
 0x415   :  { %3985 = vmatprep.mubr.msk.f32.mxu0 %vm265_vm0, %v3137_v14 }
 0x418   :  { %3986 = vmatmul.mubr.msk.f32.gmra.mrb[44].mxu0 %vm265_vm0, %v3138_v33 }
 0x419   :  { %3988 = vmatprep.mubr.msk.f32.mxu0 %vm265_vm0, %v3139_v34 }
 0x41c   :  { %3989 = vmatmul.mubr.msk.f32.gmra.mrb[46].mxu0 %vm265_vm0, %v3140_v50 }
 0x41d   :  { %4037 = vmatprep.mubr.msk.f32.mxu0 %vm265_vm0, %v3173_v51  ;;  %v2351_v51 = vpop.permute.xlu0 %2350 }
 0x420   :  { %4038 = vmatmul.mubr.msk.f32.vlgmr.msra.gmra.mrb[32].mxu0 %vm265_vm0, %v3174_v52 }
 0x421   :  { %4040 = vmatprep.mubr.msk.f32.mxu0 %vm265_vm0, %v3175_v54 }
 0x424   :  { %4041 = vmatmul.mubr.msk.f32.gmra.mrb[34].mxu0 %vm265_vm0, %v3176_v16 }
 0x425   :  { %4043 = vmatprep.mubr.msk.f32.mxu0 %vm265_vm0, %v3177_v57 }
 0x428   :  { %4044 = vmatmul.mubr.msk.f32.gmra.mrb[36].mxu0 %vm265_vm0, %v3178_v38  ;;  %v2356_v38 = vpop.permute.xlu1 %2355 }
 0x429   :  { %4046 = vmatprep.mubr.msk.f32.mxu0 %vm265_vm0, %v3179_v58 }
 0x42c   :  { %4047 = vmatmul.mubr.msk.f32.gmra.mrb[38].mxu0 %vm265_vm0, %v3180_v59  ;;  %v2366_v22 = vpop.permute.xlu1 %2365 }
 0x42d   :  { %4049 = vmatprep.mubr.msk.f32.mxu0 %vm265_vm0, %v3181_v18 }
 0x430   :  { %4050 = vmatmul.mubr.msk.f32.gmra.mrb[40].mxu0 %vm265_vm0, %v3182_v40 }
 0x431   :  { %4052 = vmatprep.mubr.msk.f32.mxu0 %vm265_vm0, %v3183_v60  ;;  %v2361_v60 = vpop.permute.xlu0 %2360 }
 0x434   :  { %4053 = vmatmul.mubr.msk.f32.gmra.mrb[42].mxu0 %vm265_vm0, %v3184_v61 }
 0x435   :  { %4055 = vmatprep.mubr.msk.f32.mxu0 %vm265_vm0, %v3185_v20  ;;  %v2371_v31 = vpop.permute.xlu0 %2370 }
 0x438   :  { %4056 = vmatmul.mubr.msk.f32.gmra.mrb[44].mxu0 %vm265_vm0, %v3186_v42 }
 0x4ef   :  { %v3990_v46 = vpop.f32.mrb[46].mxu0 }
 0x4f0   :  { %v4587_v7 = vadd.f32 %v5583_v45, %v3990_v46  ;;  %v1939_v47 = vpop.f32.mrb[47].mxu0 }
 0x4f1   :  { %v4591_v30 = vadd.f32 %v5586_v27, %v1939_v47  ;;  %v2381_v47 = vpop.permute.xlu0 %2380 }
 0x4f2   :  { %v5728_v48 = vadd.f32 %v4587_v7, %v4060_v44 }
 0x4f3   :  { %v5730_v49 = vadd.f32 %v4591_v30, %v2267_v24  ;;  %v4039_v8 = vpop.f32.mrb[32].mxu0 }
 0x4f4   :  { %v4545_v9 = vadd.f32 %v5527_v36, %v4039_v8  ;;  %v2197_v10 = vpop.f32.mrb[33].mxu0 }
 0x4f5   :  { %v4548_v56 = vadd.f32 %v5530_v37, %v2197_v10 }
 0x4f6   :  { %v2389_v11 = vadd.f32 %v4545_v9, %v2316_v5  ;;  %v2376_v5 = vpop.permute.xlu1 %2375 }
 0x4f7   :  { %v2388_v14 = vadd.f32 %v4548_v56, %v2311_v35  ;;  %v4042_v33 = vpop.f32.mrb[34].mxu0 }
 0x4f8   :  { %v4551_v45 = vadd.f32 %v5535_v55, %v4042_v33  ;;  %v2207_v34 = vpop.f32.mrb[35].mxu0  ;;  %v2405_v52 = vmax.f32 %v2389_v11, 0.0  ;;  %v4650_v33 = vmov 0.0  }
 0x4f9   :  { %v2404_v27 = vmax.f32 %v2388_v14, 0.0  ;;  %v4554_v50 = vadd.f32 %v5538_v15, %v2207_v34 }
 0x4fa   :  { %v2391_v54 = vadd.f32 %v4551_v45, %v2326_v28  ;;  %v2386_v10 = vpop.permute.xlu1 %2385 }
 0x4fb   :  { %v2390_v16 = vadd.f32 %v4554_v50, %v2321_v4  ;;  %v4045_v57 = vpop.f32.mrb[36].mxu0  ;;  %4073 = vmatprep.mubr.msk.f32.mxu1 %vm2426_vm4, %v2404_v27 }
 0x4fc   :  { %v4557_v36 = vadd.f32 %v5543_v39, %v4045_v57  ;;  %v2217_v37 = vpop.f32.mrb[37].mxu0  ;;  %4074 = vmatmul.mubr.msk.f32.vlgmr.msra.gmra.mrb[46].mxu1 %vm2426_vm4, %v2405_v52  ;;  %v2407_v59 = vmax.f32 %v2391_v54, 0.0 }
 0x4fd   :  { %v2406_v58 = vmax.f32 %v2390_v16, 0.0  ;;  %v4560_v55 = vadd.f32 %v5546_v17, %v2217_v37 }
 0x4fe   :  { %v2393_v18 = vadd.f32 %v4557_v36, %v2336_v29 }
 0x4ff   :  { %v2392_v40 = vadd.f32 %v4560_v55, %v2331_v6  ;;  %v4048_v15 = vpop.f32.mrb[38].mxu0  ;;  %4076 = vmatprep.mubr.msk.f32.mxu1 %vm2426_vm4, %v2406_v58 }
 0x500   :  { %v4563_v61 = vadd.f32 %v5551_v41, %v4048_v15  ;;  %v2227_v20 = vpop.f32.mrb[39].mxu0  ;;  %4077 = vmatmul.mubr.msk.f32.gmra.mrb[48].mxu1 %vm2426_vm4, %v2407_v59  ;;  %v2409_v62 = vmax.f32 %v2393_v18, 0.0 }
 0x501   :  { %v2408_v39 = vmax.f32 %v2392_v40, 0.0  ;;  %v4566_v42 = vadd.f32 %v5554_v19, %v2227_v20 }
 0x502   :  { %v2395_v63 = vadd.f32 %v4563_v61, %v2346_v12  ;;  %v2403_v12 = vadd.f32 %v5728_v48, %v2386_v10 }
 0x503   :  { %v2394_v44 = vadd.f32 %v4566_v42, %v2341_v53  ;;  %v4051_v17 = vpop.f32.mrb[40].mxu0  ;;  %4079 = vmatprep.mubr.msk.f32.mxu1 %vm2426_vm4, %v2408_v39 }
 0x504   :  { %v4569_v0 = vadd.f32 %v5559_v43, %v4051_v17  ;;  %v2237_v1 = vpop.f32.mrb[41].mxu0  ;;  %4080 = vmatmul.mubr.msk.f32.gmra.mrb[50].mxu1 %vm2426_vm4, %v2409_v62  ;;  %v2411_v2 = vmax.f32 %v2395_v63, 0.0  ;;  %v2624_v62 = vld [vmem:[%s5891_s3] sm:$0xff]  ;;  %v2625_v63 = vld [vmem:[%s5891_s3 + $0x8] sm:$0xff] }
 0x505   :  { %v2410_v24 = vmax.f32 %v2394_v44, 0.0  ;;  %v4572_v41 = vadd.f32 %v5562_v21, %v2237_v1  ;;  %v2627_v44 = vld [vmem:[%s5891_s3 + $0x18] sm:$0xff]  ;;  %v2628_v17 = vld [vmem:[%s5891_s3 + $0x20] sm:$0xff]  ;;  %v2630_v1 = vld [vmem:[%s5891_s3 + $0x30] sm:$0xff] }
 0x506   :  { %v2397_v3 = vadd.f32 %v4569_v0, %v2356_v38  ;;  %v2629_v0 = vld [vmem:[%s5891_s3 + $0x28] sm:$0xff] }
 0x507   :  { %v2396_v26 = vadd.f32 %v4572_v41, %v2351_v51  ;;  %v4054_v19 = vpop.f32.mrb[42].mxu0  ;;  %4082 = vmatprep.mubr.msk.f32.mxu1 %vm2426_vm4, %v2410_v24  ;;  %v2631_v24 = vld [vmem:[%s5891_s3 + $0x38] sm:$0xff]  ;;  %v2632_v41 = vld [vmem:[%s5891_s3 + $0x40] sm:$0xff] }
 0x508   :  { %v4575_v35 = vadd.f32 %v5567_v13, %v4054_v19  ;;  %v2247_v4 = vpop.f32.mrb[43].mxu0  ;;  %4083 = vmatmul.mubr.msk.f32.gmra.mrb[52].mxu1 %vm2426_vm4, %v2411_v2  ;;  %v2413_v6 = vmax.f32 %v2397_v3, 0.0  ;;  %v2634_v2 = vld [vmem:[%s5891_s3 + $0x50] sm:$0xff]  ;;  %v2635_v3 = vld [vmem:[%s5891_s3 + $0x58] sm:$0xff]  ;;  %v2780_v19 = vld [vmem:[%s5891_s3 + $0x68] sm:$0xff] }
 0x509   :  { %v2412_v43 = vmax.f32 %v2396_v26, 0.0  ;;  %v4578_v28 = vadd.f32 %v5570_v23, %v2247_v4  ;;  %v2402_v23 = vadd.f32 %v5730_v49, %v2381_v47  ;;  %v4648_v49 = vmov 0.0|0.0   ;;  %v2636_v26 = vld [vmem:[%s5891_s3 + $0x60] sm:$0xf] }
 0x50a   :  { %v2399_v46 = vadd.f32 %v4575_v35, %v2366_v22  ;;  %4491 = vmatprep.subr.bf16.mxu1 %v4648_v49  ;;  %v2626_v22 = vld [vmem:[%s5891_s3 + $0x10] sm:$0xff] }
 0x50b   :  { %v2398_v7 = vadd.f32 %v4578_v28, %v2361_v60  ;;  %v4057_v21 = vpop.f32.mrb[44].mxu0  ;;  %4085 = vmatprep.mubr.msk.f32.mxu1 %vm2426_vm4, %v2412_v43  ;;  %v2418_v14 = vmax.f32 %v2402_v23, 0.0  ;;  %v2768_v43 = vld [vmem:[%s5891_s3 + $0x80] sm:$0xff] }
 0x50c   :  { %v4581_v29 = vadd.f32 %v5575_v32, %v4057_v21  ;;  %v2257_v30 = vpop.f32.mrb[45].mxu0  ;;  %4086 = vmatmul.mubr.msk.f32.gmra.mrb[54].mxu1 %vm2426_vm4, %v2413_v6  ;;  %v2415_v53 = vmax.f32 %v2399_v46, 0.0 }
 0x50d   :  { %v2414_v13 = vmax.f32 %v2398_v7, 0.0  ;;  %v4584_v8 = vadd.f32 %v5578_v25, %v2257_v30  ;;  %v2419_v25 = vmax.f32 %v2403_v12, 0.0  ;;  %v2769_v30 = vld [vmem:[%s5891_s3 + $0x88] sm:$0xff]  ;;  %v2771_v12 = vld [vmem:[%s5891_s3 + $0x98] sm:$0xff] }
 0x50e   :  { %v2401_v9 = vadd.f32 %v4581_v29, %v2376_v5  ;;  %v2767_v5 = vld [vmem:[%s5891_s3 + $0x78] sm:$0xff] }
 0x50f   :  { %v2400_v56 = vadd.f32 %v4584_v8, %v2371_v31  ;;  %4088 = vmatprep.mubr.msk.f32.mxu1 %vm2426_vm4, %v2414_v13  ;;  %v2633_v31 = vld [vmem:[%s5891_s3 + $0x48] sm:$0xff]  ;;  %v2770_v13 = vld [vmem:[%s5891_s3 + $0x90] sm:$0xff] }
 0x510   :  { %4089 = vmatmul.mubr.msk.f32.gmra.mrb[56].mxu1 %vm2426_vm4, %v2415_v53  ;;  %v2417_v32 = vmax.f32 %v2401_v9, 0.0 }
 0x511   :  { %v2416_v11 = vmax.f32 %v2400_v56, 0.0 }
 0x513   :  { %4091 = vmatprep.mubr.msk.f32.mxu1 %vm2426_vm4, %v2416_v11 }
 0x514   :  { %4092 = vmatmul.mubr.msk.f32.gmra.mrb[58].mxu1 %vm2426_vm4, %v2417_v32  ;;  %v2772_v32 = vld [vmem:[%s5891_s3 + $0xa0] sm:$0xff] }
 0x515   :  { %4094 = vmatprep.mubr.msk.f32.mxu1 %vm2426_vm4, %v2418_v14 }
 0x518   :  { %4095 = vmatmul.mubr.msk.f32.gmra.mrb[60].mxu1 %vm2426_vm4, %v2419_v25 }
 0x519   :  { %4129 = vmatprep.mubr.msk.f32.mxu1 %vm4649_vm5, %v4650_v33 }
 0x5cf   :  { %v4075_v45 = vpop.f32.mrb[46].mxu1 }
 0x5d0   :  { %v2545_v48 = vpop.f32.mrb[47].mxu1 }
 0x5d1   :  { %v4492_v34 = vpack.c.bf16 %v4075_v45, %v2545_v48 }
 0x5d3   :  { %v4078_v27 = vpop.f32.mrb[48].mxu1  ;;  %4493 = vmatpush3.bf16.msra.mxu1 %v4492_v34 }
 0x5d4   :  { %v2555_v50 = vpop.f32.mrb[49].mxu1  ;;  %4494 = vmatprep.subr.bf16.mxu1 %v4648_v49 }
 0x5d5   :  { %v4495_v51 = vpack.c.bf16 %v4078_v27, %v2555_v50  ;;  %v2773_v27 = vld [vmem:[%s5891_s3 + $0xa8] sm:$0xff]  ;;  %v2774_v50 = vld [vmem:[%s5891_s3 + $0xb0] sm:$0xff] }
 0x5d7   :  { %v4081_v52 = vpop.f32.mrb[50].mxu1  ;;  %4496 = vmatpush3.bf16.msra.mxu1 %v4495_v51 }
 0x5d8   :  { %v2565_v54 = vpop.f32.mrb[51].mxu1  ;;  %4497 = vmatprep.subr.bf16.mxu1 %v4648_v49 }
 0x5d9   :  { %v4498_v16 = vpack.c.bf16 %v4081_v52, %v2565_v54 }
 0x5db   :  { %v4084_v57 = vpop.f32.mrb[52].mxu1  ;;  %4499 = vmatpush3.bf16.msra.mxu1 %v4498_v16 }
 0x5dc   :  { %v2575_v36 = vpop.f32.mrb[53].mxu1  ;;  %4500 = vmatprep.subr.bf16.mxu1 %v4648_v49 }
 0x5dd   :  { %v4501_v37 = vpack.c.bf16 %v4084_v57, %v2575_v36 }
 0x5df   :  { %v4087_v38 = vpop.f32.mrb[54].mxu1  ;;  %4502 = vmatpush3.bf16.msra.mxu1 %v4501_v37 }
 0x5e0   :  { %v2585_v58 = vpop.f32.mrb[55].mxu1  ;;  %4503 = vmatprep.subr.bf16.mxu1 %v4648_v49 }
 0x5e1   :  { %v4504_v55 = vpack.c.bf16 %v4087_v38, %v2585_v58  ;;  %v2775_v38 = vld [vmem:[%s5891_s3 + $0xb8] sm:$0xff]  ;;  %v2776_v58 = vld [vmem:[%s5891_s3 + $0xc0] sm:$0xff] }
 0x5e3   :  { %v4090_v59 = vpop.f32.mrb[56].mxu1  ;;  %4505 = vmatpush3.bf16.msra.mxu1 %v4504_v55 }
 0x5e4   :  { %v2595_v18 = vpop.f32.mrb[57].mxu1  ;;  %4506 = vmatprep.subr.bf16.mxu1 %v4648_v49 }
 0x5e5   :  { %v4507_v40 = vpack.c.bf16 %v4090_v59, %v2595_v18 }
 0x5e7   :  { %v4093_v15 = vpop.f32.mrb[58].mxu1  ;;  %4508 = vmatpush3.bf16.msra.mxu1 %v4507_v40 }
 0x5e8   :  { %v2605_v60 = vpop.f32.mrb[59].mxu1  ;;  %4509 = vmatprep.subr.bf16.mxu1 %v4648_v49 }
 0x5e9   :  { %v4510_v61 = vpack.c.bf16 %v4093_v15, %v2605_v60 }
 0x5eb   :  { %v4096_v20 = vpop.f32.mrb[60].mxu1  ;;  %4511 = vmatpush3.bf16.msra.mxu1 %v4510_v61 }
 0x5ec   :  { %v2615_v39 = vpop.f32.mrb[61].mxu1  ;;  %4512 = vmatprep.subr.bf16.mxu1 %v4648_v49 }
 0x5ed   :  { %v4513_v42 = vpack.c.bf16 %v4096_v20, %v2615_v39  ;;  %v2777_v20 = vld [vmem:[%s5891_s3 + $0xc8] sm:$0xff]  ;;  %v2778_v39 = vld [vmem:[%s5891_s3 + $0xd0] sm:$0xff] }
 0x5ef   :  { %4514 = vmatpush3.bf16.msra.mxu1 %v4513_v42 }
 0x5f2   :  { %4130 = vmatmul.mubr.f32.vlgmr.msra.gmra.mrb[62].mxu1 %v2624_v62 }
 0x5f3   :  { %4132 = vmatprep.mubr.msk.f32.mxu1 %vm4649_vm5, %v4650_v33 }
 0x5f6   :  { %4133 = vmatmul.mubr.f32.gmra.mrb[64].mxu1 %v2625_v63 }
 0x5f7   :  { %4135 = vmatprep.mubr.msk.f32.mxu1 %vm4649_vm5, %v4650_v33 }
 0x5fa   :  { %4136 = vmatmul.mubr.f32.gmra.mrb[66].mxu1 %v2626_v22 }
 0x5fb   :  { %4138 = vmatprep.mubr.msk.f32.mxu1 %vm4649_vm5, %v4650_v33 }
 0x5fe   :  { %4139 = vmatmul.mubr.f32.gmra.mrb[68].mxu1 %v2627_v44  ;;  %v2779_v44 = vld [vmem:[%s5891_s3 + $0xd8] sm:$0xf] }
 0x5ff   :  { %4141 = vmatprep.mubr.msk.f32.mxu1 %vm4649_vm5, %v4650_v33 }
 0x602   :  { %4142 = vmatmul.mubr.f32.gmra.mrb[70].mxu1 %v2628_v17 }
 0x603   :  { %4144 = vmatprep.mubr.msk.f32.mxu1 %vm4649_vm5, %v4650_v33 }
 0x606   :  { %4145 = vmatmul.mubr.f32.gmra.mrb[72].mxu1 %v2629_v0 }
 0x607   :  { %4147 = vmatprep.mubr.msk.f32.mxu1 %vm4649_vm5, %v4650_v33 }
 0x60a   :  { %4148 = vmatmul.mubr.f32.gmra.mrb[74].mxu1 %v2630_v1 }
 0x60b   :  { %4150 = vmatprep.mubr.msk.f32.mxu1 %vm4649_vm5, %v4650_v33 }
 0x60e   :  { %4151 = vmatmul.mubr.f32.gmra.mrb[76].mxu1 %v2631_v24 }
 0x60f   :  { %4153 = vmatprep.mubr.msk.f32.mxu1 %vm4649_vm5, %v4650_v33 }
 0x612   :  { %4154 = vmatmul.mubr.f32.gmra.mrb[78].mxu1 %v2632_v41  ;;  %v2781_v41 = vld [vmem:[%s5891_s3 + $0x70] sm:$0x3] }
 0x613   :  { %4156 = vmatprep.mubr.msk.f32.mxu1 %vm4649_vm5, %v4650_v33 }
 0x616   :  { %4157 = vmatmul.mubr.f32.gmra.mrb[80].mxu1 %v2633_v31 }
 0x617   :  { %4159 = vmatprep.mubr.msk.f32.mxu1 %vm4649_vm5, %v4650_v33 }
 0x61a   :  { %4160 = vmatmul.mubr.f32.gmra.mrb[82].mxu1 %v2634_v2 }
 0x61b   :  { %4162 = vmatprep.mubr.msk.f32.mxu1 %vm4649_vm5, %v4650_v33 }
 0x61e   :  { %4163 = vmatmul.mubr.f32.gmra.mrb[84].mxu1 %v2635_v3 }
 0x61f   :  { %4165 = vmatprep.mubr.msk.f32.mxu1 %vm4649_vm5, %v4650_v33 }
 0x622   :  { %4166 = vmatmul.mubr.f32.gmra.mrb[86].mxu1 %v2636_v26 }
 0x623   :  { %4194 = vmatprep.mubr.msk.f32.mxu1 %vm2795_vm6, %v2780_v19  ;;  %v2882_v19 = vld [vmem:[%s5891_s3 + $0x198] sm:$0x3] }
 0x6c5   :  { %v2703_v35 = vpop.f32.mrb[62].mxu1 }
 0x6c6   :  { %v4131_v4 = vpop.f32.mrb[63].mxu1  ;;  %v2782_v6 = vmul.f32 %v2767_v5, %v2703_v35  ;;  %v2881_v35 = vld [vmem:[%s5891_s3 + $0x190] sm:$0xff] }
 0x6c9   :  { %v2708_v28 = vpop.f32.mrb[64].mxu1 }
 0x6ca   :  { %v2783_v46 = vmul.f32 %v2768_v43, %v2708_v28  ;;  %v4134_v7 = vpop.f32.mrb[65].mxu1 }
 0x6cc   :  { %v4515_v21 = vpack.c.bf16 %v2783_v46, %v2782_v6 }
 0x6cd   :  { %v2713_v47 = vpop.f32.mrb[66].mxu1 }
 0x6ce   :  { %v4137_v29 = vpop.f32.mrb[67].mxu1  ;;  %4516 = vmatprep.subr.bf16.mxu1 %v4515_v21  ;;  %v2784_v53 = vmul.f32 %v2769_v30, %v2713_v47 }
 0x6cf   :  { %4518 = vmatpush3.bf16.msra.mxu1 %v4515_v21 }
 0x6d1   :  { %v2718_v8 = vpop.f32.mrb[68].mxu1 }
 0x6d2   :  { %v2785_v9 = vmul.f32 %v2770_v13, %v2718_v8  ;;  %v4140_v10 = vpop.f32.mrb[69].mxu1 }
 0x6d4   :  { %v4519_v23 = vpack.c.bf16 %v2785_v9, %v2784_v53 }
 0x6d5   :  { %v2723_v56 = vpop.f32.mrb[70].mxu1 }
 0x6d6   :  { %v4143_v11 = vpop.f32.mrb[71].mxu1  ;;  %4520 = vmatprep.subr.bf16.mxu1 %v4519_v23  ;;  %v2786_v25 = vmul.f32 %v2771_v12, %v2723_v56 }
 0x6d7   :  { %4522 = vmatpush3.bf16.msra.mxu1 %v4519_v23 }
 0x6d9   :  { %v2728_v14 = vpop.f32.mrb[72].mxu1 }
 0x6da   :  { %v2787_v49 = vmul.f32 %v2772_v32, %v2728_v14  ;;  %v4146_v33 = vpop.f32.mrb[73].mxu1 }
 0x6dc   :  { %v4523_v45 = vpack.c.bf16 %v2787_v49, %v2786_v25 }
 0x6dd   :  { %v2733_v48 = vpop.f32.mrb[74].mxu1 }
 0x6de   :  { %v4149_v34 = vpop.f32.mrb[75].mxu1  ;;  %4524 = vmatprep.subr.bf16.mxu1 %v4523_v45  ;;  %v2788_v52 = vmul.f32 %v2773_v27, %v2733_v48 }
 0x6df   :  { %4526 = vmatpush3.bf16.msra.mxu1 %v4523_v45 }
 0x6e1   :  { %v2738_v51 = vpop.f32.mrb[76].mxu1 }
 0x6e2   :  { %v2789_v54 = vmul.f32 %v2774_v50, %v2738_v51  ;;  %v4152_v16 = vpop.f32.mrb[77].mxu1 }
 0x6e4   :  { %v4527_v57 = vpack.c.bf16 %v2789_v54, %v2788_v52 }
 0x6e5   :  { %v2743_v36 = vpop.f32.mrb[78].mxu1 }
 0x6e6   :  { %v4155_v37 = vpop.f32.mrb[79].mxu1  ;;  %4528 = vmatprep.subr.bf16.mxu1 %v4527_v57  ;;  %v2790_v59 = vmul.f32 %v2775_v38, %v2743_v36 }
 0x6e7   :  { %4530 = vmatpush3.bf16.msra.mxu1 %v4527_v57 }
 0x6e9   :  { %v2748_v55 = vpop.f32.mrb[80].mxu1 }
 0x6ea   :  { %v2791_v18 = vmul.f32 %v2776_v58, %v2748_v55  ;;  %v4158_v40 = vpop.f32.mrb[81].mxu1 }
 0x6ec   :  { %v4531_v15 = vpack.c.bf16 %v2791_v18, %v2790_v59 }
 0x6ed   :  { %v2753_v60 = vpop.f32.mrb[82].mxu1 }
 0x6ee   :  { %v4161_v61 = vpop.f32.mrb[83].mxu1  ;;  %4532 = vmatprep.subr.bf16.mxu1 %v4531_v15  ;;  %v2792_v62 = vmul.f32 %v2777_v20, %v2753_v60 }
 0x6ef   :  { %4534 = vmatpush3.bf16.msra.mxu1 %v4531_v15 }
 0x6f1   :  { %v2758_v42 = vpop.f32.mrb[84].mxu1 }
 0x6f2   :  { %v2793_v63 = vmul.f32 %v2778_v39, %v2758_v42  ;;  %v4164_v22 = vpop.f32.mrb[85].mxu1 }
 0x6f4   :  { %v4535_v17 = vpack.c.bf16 %v2793_v63, %v2792_v62 }
 0x6f5   :  { %v2763_v0 = vpop.f32.mrb[86].mxu1 }
 0x6f6   :  { %4536 = vmatprep.subr.bf16.mxu1 %v4535_v17  ;;  %v2794_v1 = vmul.f32 %v2779_v44, %v2763_v0  ;;  %v4167_v24 = vpop.f32.mrb[87].mxu1 }
 0x6f7   :  { %4538 = vmatpush3.bf16.msra.mxu1 %v4535_v17 }
 0x6f8   :  { %4192 = vmatprep.subr.msk.mxu1 %vm2802_vm7, %v2794_v1 }
 0x6fb   :  { %4193 = vmatpush3.msk.msra.mxu1 %vm2802_vm7, %v2794_v1 }
 0x6fc   :  { %4195 = vmatmul.mubr.msk.f32.vlgmr.msra.gmra.mrb[88].mxu1 %vm2795_vm6, %v2781_v41 }
 0x7cf   :  { %v4196_v31 = vpop.f32.mrb[88].mxu1 }
 0x7d0   :  { %v2872_v2 = vpop.f32.mrb[89].mxu1  ;;  %v2888_v3 = vsel %vm2887_vm8, %v4196_v31, 0.0 }
 0x7d1   :  { %2889 = vadd.xlane.f32.xlu1 %v2888_v3  ;;  %v2884_v26 = vsel %vm2883_vm9, %v2872_v2, 0.0 }
 0x7d2   :  { %2885 = vadd.xlane.f32.xlu0 %v2884_v26 }
 0x85e   :  { %v2890_v4 = vpop.xlane.xlu1 %2889 }
 0x85f   :  { %v2892_v5 = vadd.f32 %v2890_v4, %v2882_v19  ;;  %v2886_v43 = vpop.xlane.xlu0 %2885 }
 0x860   :  { %v2891_v28 = vadd.f32 %v2886_v43, %v2881_v35 }
 0x861   :  { %2896 = vst.msk [vmem:[%s5892_s4 + $0x8] sm:$0x3] %vm2895_vm10, %v2892_v5 }
 0x862   :  { %2894 = vst.msk [vmem:[%s5892_s4] sm:$0xff] %vm2893_vm11, %v2891_v28 }

</bundles_post_ra>
